<compile_context>
chip_gen: v6e
topology: v6e:2x2x1
jax: 0.10.0
libtpu: 0.0.40
codegen_flags: <defaults>
</compile_context>

<pallas_src>
import functools

import jax
import jax.numpy as jnp
from jax import lax
from jax.experimental import pallas as pl
from jax.experimental.pallas import tpu as pltpu


def _dw_bn_relu_kernel(x_ref, top_ref, bot_ref, w_ref, shift_ref, o_ref,
                       acc_ref, *, TH, W):
    # x_ref:     (1, TH, W, C)  current row band (one batch elem, one C group)
    # top_ref:   (1, 1,  W, C)  row above the band (clamped at the border)
    # bot_ref:   (1, 1,  W, C)  row below the band (clamped at the border)
    # w_ref:     (3, 3,  C)     depthwise taps with BN scale folded in (f32)
    # shift_ref: (1, C)         fused  beta + (conv_bias - mean) * scale (f32)
    # o_ref:     (1, TH, W, C)
    # acc_ref:   (TH, W, C)     f32 VMEM accumulator
    i = pl.program_id(2)          # row-band index (grid = (n_c, B, n_h))
    n_h = pl.num_programs(2)
    f32 = jnp.float32

    x = x_ref[0].astype(f32)      # (TH, W, C)
    w = w_ref[...]                # (3, 3, C)

    # +-1 column shifts on the XLU, UNMASKED: the wrapped boundary columns are
    # corrected with a 1-column fix-up at the end (cheaper than two full-band
    # mask multiplies on this VALU-bound path).
    xl = pltpu.roll(x, 1, axis=1)        # xl[:, c] = x[:, c-1]  (wrap at col 0)
    xr = pltpu.roll(x, W - 1, axis=1)    # xr[:, c] = x[:, c+1]  (wrap at col W-1)

    # Center tap row for every output row.
    acc_ref[...] = xl * w[1, 0] + x * w[1, 1] + xr * w[1, 2]

    if TH > 1:
        # Row-above taps for interior output rows 1..TH-1 (leading-axis views).
        acc_ref[1:TH] = (acc_ref[1:TH]
                         + xl[0:TH - 1] * w[0, 0]
                         + x[0:TH - 1] * w[0, 1]
                         + xr[0:TH - 1] * w[0, 2])
        # Row-below taps for interior output rows 0..TH-2.
        acc_ref[0:TH - 1] = (acc_ref[0:TH - 1]
                             + xl[1:TH] * w[2, 0]
                             + x[1:TH] * w[2, 1]
                             + xr[1:TH] * w[2, 2])

    # Halo rows: index_map clamps them to a valid image row; zero them at the
    # true image border so they act as the conv's zero padding.
    top = top_ref[0].astype(f32) * (i > 0).astype(f32)          # (1, W, C)
    bot = bot_ref[0].astype(f32) * (i < n_h - 1).astype(f32)    # (1, W, C)
    topl = pltpu.roll(top, 1, axis=1)
    topr = pltpu.roll(top, W - 1, axis=1)
    botl = pltpu.roll(bot, 1, axis=1)
    botr = pltpu.roll(bot, W - 1, axis=1)
    acc_ref[0:1] = acc_ref[0:1] + topl * w[0, 0] + top * w[0, 1] + topr * w[0, 2]
    acc_ref[TH - 1:TH] = (acc_ref[TH - 1:TH]
                          + botl * w[2, 0] + bot * w[2, 1] + botr * w[2, 2])

    # 1-column fix-up of the roll wrap: output column 0 must not see input
    # column W-1 (left taps w[:,0]) and column W-1 must not see column 0
    # (right taps w[:,2]).  Only (TH, 1, C) of work.
    col_r = jnp.concatenate([top[:, W - 1:W, :], x[:, W - 1:W, :],
                             bot[:, W - 1:W, :]], axis=0)        # (TH+2, 1, C)
    col_l = jnp.concatenate([top[:, 0:1, :], x[:, 0:1, :],
                             bot[:, 0:1, :]], axis=0)            # (TH+2, 1, C)
    corr_left = (col_r[0:TH] * w[0, 0] + col_r[1:TH + 1] * w[1, 0]
                 + col_r[2:TH + 2] * w[2, 0])                    # (TH, 1, C)
    corr_right = (col_l[0:TH] * w[0, 2] + col_l[1:TH + 1] * w[1, 2]
                  + col_l[2:TH + 2] * w[2, 2])                   # (TH, 1, C)
    acc_ref[:, 0:1, :] = acc_ref[:, 0:1, :] - corr_left
    acc_ref[:, W - 1:W, :] = acc_ref[:, W - 1:W, :] - corr_right

    # Epilogue: fused BN shift + ReLU, stored in the caller's dtype.
    y = acc_ref[...] + shift_ref[0, :]
    o_ref[0] = jnp.maximum(y, 0.0).astype(o_ref.dtype)


def _pick_channel_tile(C):
    # Lane axis: 128-channel groups when C allows, otherwise the full C
    # (the (8,128) rule then holds because the block equals the full dim).
    if C > 128 and C % 128 == 0:
        return 128
    return C


def _vmem_budgets():
    # (band_budget_bytes_f32, vmem_limit_bytes), generation-aware:
    # v7x has 64 MiB VMEM per TensorCore, v5e/v6e have 128 MiB.
    try:
        cap = int(pltpu.get_tpu_info().vmem_capacity_bytes)
    except Exception:
        cap = 64 << 20  # conservative: assume v7x
    if cap <= (64 << 20):
        return 2 << 20, 32 << 20
    return 4 << 20, 64 << 20


def _pick_row_tile(H, W, C_blk, other_parallel, band_budget, itemsize=4):
    # Largest divisor of H whose f32 band stays under the budget.  Only force
    # >= 2 row bands when batch/channel groups don't already feed both v7x TCs.
    divisors = [d for d in range(1, H + 1) if H % d == 0]
    fits = [d for d in divisors if d * W * C_blk * itemsize <= band_budget] or [1]
    if other_parallel >= 2:
        return max(fits)
    multi = [d for d in fits if H // d >= 2]
    return max(multi) if multi else max(fits)


def dw_bn_relu(x, H, W, params, *, row_tile=None):
    """x: (B, N, C) with N == H*W.  Returns (B, N, C).  Inference-mode BN."""
    B, N, C = x.shape
    assert N == H * W

    w = params["dw_weight"]          # (3, 3, C)
    conv_bias = params["dw_bias"]    # (C,)
    gamma = params["bn_weight"]      # (C,)
    beta = params["bn_bias"]         # (C,)
    mean = params["bn_running_mean"]
    var = params["bn_running_var"]
    eps = params["bn_eps"]

    # Fold conv bias + inference-mode BN: scale goes into the taps, the rest
    # into a per-channel shift (glue; runs once per call on tiny tensors).
    scale = gamma / jnp.sqrt(var + eps)                               # (C,)
    w_scaled = (w.astype(jnp.float32) * scale).astype(jnp.float32)    # (3, 3, C)
    shift = (beta + (conv_bias - mean) * scale).reshape(1, C).astype(jnp.float32)

    # (B, N, C) -> NHWC view (free reshape); the 1-pixel halo is in-kernel.
    x_nhwc = x.reshape(B, H, W, C)

    TC = _pick_channel_tile(C)
    n_c = C // TC
    band_budget, vmem_limit = _vmem_budgets()
    if row_tile is not None:
        assert H % row_tile == 0
        TH = row_tile
    else:
        TH = _pick_row_tile(H, W, TC, B * n_c, band_budget)
    n_h = H // TH

    kernel = functools.partial(_dw_bn_relu_kernel, TH=TH, W=W)

    out = pl.pallas_call(
        kernel,
        out_shape=jax.ShapeDtypeStruct((B, H, W, C), x.dtype),
        grid_spec=pltpu.PrefetchScalarGridSpec(
            num_scalar_prefetch=0,
            # Channel group outermost: w_scaled / shift keep the same block
            # index across the whole inner B x n_h loop (no re-DMA per step).
            grid=(n_c, B, n_h),
            in_specs=[
                # current row band
                pl.BlockSpec((1, TH, W, TC), lambda c, b, i: (b, i, 0, c)),
                # halo row above / below (clamped at the image border; the
                # kernel zeroes their contribution there)
                pl.BlockSpec((1, 1, W, TC),
                             lambda c, b, i: (b, jnp.maximum(i * TH - 1, 0), 0, c)),
                pl.BlockSpec((1, 1, W, TC),
                             lambda c, b, i: (b, jnp.minimum(i * TH + TH, H - 1), 0, c)),
                pl.BlockSpec((3, 3, TC), lambda c, b, i: (0, 0, c)),
                pl.BlockSpec((1, TC), lambda c, b, i: (0, c)),
            ],
            out_specs=pl.BlockSpec((1, TH, W, TC), lambda c, b, i: (b, i, 0, c)),
            scratch_shapes=[pltpu.VMEM((TH, W, TC), jnp.float32)],
        ),
        compiler_params=pltpu.CompilerParams(
            dimension_semantics=("parallel", "parallel", "parallel"),
            vmem_limit_bytes=vmem_limit),
    )(x_nhwc, x_nhwc, x_nhwc, w_scaled, shift)

    return out.reshape(B, N, C)


def dw_bn_relu_reference(x, H, W, params):
    """Pure-JAX reference (NHWC depthwise conv via lax)."""
    B, N, C = x.shape
    x_nhwc = x.reshape(B, H, W, C)
    w = params["dw_weight"].reshape(3, 3, 1, C)
    y = lax.conv_general_dilated(
        x_nhwc, w, window_strides=(1, 1), padding=((1, 1), (1, 1)),
        dimension_numbers=("NHWC", "HWIO", "NHWC"),
        feature_group_count=C)
    y = y + params["dw_bias"]
    scale = params["bn_weight"] / jnp.sqrt(params["bn_running_var"] + params["bn_eps"])
    y = (y - params["bn_running_mean"]) * scale + params["bn_bias"]
    y = jnp.maximum(y, 0.0)
    return y.reshape(B, N, C)


def init_params(key, dim):
    k_w, k_b, k_g, k_beta = jax.random.split(key, 4)
    return {
        # PyTorch dwconv weight is (dim, 1, 3, 3); we store it as (3, 3, dim).
        "dw_weight": 0.1 * jax.random.normal(k_w, (3, 3, dim), jnp.float32),
        "dw_bias": 0.05 * jax.random.normal(k_b, (dim,), jnp.float32),
        "bn_weight": 1.0 + 0.1 * jax.random.normal(k_g, (dim,), jnp.float32),
        "bn_bias": 0.1 * jax.random.normal(k_beta, (dim,), jnp.float32),
        "bn_running_mean": jnp.zeros((dim,), jnp.float32),
        "bn_running_var": jnp.ones((dim,), jnp.float32),
        "bn_eps": 1e-5,
    }


if __name__ == "__main__":
    B, C, H, W = 2, 4, 16, 16
    N = H * W

    key = jax.random.PRNGKey(0)
    k_x, k_p = jax.random.split(key)
    x = jax.random.normal(k_x, (B, N, C), jnp.float32)
    params = init_params(k_p, C)

    ref = dw_bn_relu_reference(x, H, W, params)

    # Default tiling (single row band for this small shape).
    out = dw_bn_relu(x, H, W, params)
    out = jax.block_until_ready(out)
    assert out.shape == (B, N, C)
    assert jnp.allclose(out, ref, atol=1e-4, rtol=1e-4), "mismatch vs reference"

    # Forced multi-band tiling to exercise the in-kernel halo / border path.
    out2 = dw_bn_relu(x, H, W, params, row_tile=4)
    out2 = jax.block_until_ready(out2)
    assert jnp.allclose(out2, ref, atol=1e-4, rtol=1e-4), "mismatch (multi-band)"

    print("KERNEL_OK")
</pallas_src>

<mosaic_0001>
module attributes {stable_mosaic.version = 11 : i64} {
  func.func @_dw_bn_relu_kernel(%arg0: i32, %arg1: i32, %arg2: i32, %arg3: memref<1x16x16x4xf32, #tpu.memory_space<vmem>>, %arg4: memref<1x1x16x4xf32, #tpu.memory_space<vmem>>, %arg5: memref<1x1x16x4xf32, #tpu.memory_space<vmem>>, %arg6: memref<3x3x4xf32, #tpu.memory_space<vmem>>, %arg7: memref<1x4xf32, #tpu.memory_space<vmem>>, %arg8: memref<1x16x16x4xf32, #tpu.memory_space<vmem>>, %arg9: memref<16x16x4xf32, #tpu.memory_space<vmem>>) attributes {dimension_semantics = [#tpu.dimension_semantics<parallel>, #tpu.dimension_semantics<parallel>, #tpu.dimension_semantics<parallel>], iteration_bounds = array<i64: 1, 2, 1>, scalar_prefetch = 0 : i64, scratch_operands = 1 : i64, tpu.core_type = #tpu.core_type<tc>, window_params = [{transform_indices = @transform_0, window_bounds = array<i64: 1, 16, 16, 4>}, {transform_indices = @transform_1, window_bounds = array<i64: 1, 1, 16, 4>}, {transform_indices = @transform_2, window_bounds = array<i64: 1, 1, 16, 4>}, {transform_indices = @transform_3, window_bounds = array<i64: 3, 3, 4>}, {transform_indices = @transform_4, window_bounds = array<i64: 1, 4>}, {transform_indices = @transform_5, window_bounds = array<i64: 1, 16, 16, 4>}]} {
    %c0 = arith.constant 0 : index
    %c0_0 = arith.constant 0 : index
    %c0_1 = arith.constant 0 : index
    %c0_2 = arith.constant 0 : index
    %0 = vector.load %arg3[%c0, %c0_0, %c0_1, %c0_2] : memref<1x16x16x4xf32, #tpu.memory_space<vmem>>, vector<1x16x16x4xf32>
    %1 = vector.shape_cast %0 : vector<1x16x16x4xf32> to vector<16x16x4xf32>
    %c0_3 = arith.constant 0 : index
    %c0_4 = arith.constant 0 : index
    %c0_5 = arith.constant 0 : index
    %2 = vector.load %arg6[%c0_3, %c0_4, %c0_5] : memref<3x3x4xf32, #tpu.memory_space<vmem>>, vector<3x3x4xf32>
    %c1_i32 = arith.constant 1 : i32
    %3 = tpu.dynamic_rotate %1 by %c1_i32 dim 1 : vector<16x16x4xf32>, i32 -> vector<16x16x4xf32>
    %c15_i32 = arith.constant 15 : i32
    %4 = tpu.dynamic_rotate %1 by %c15_i32 dim 1 : vector<16x16x4xf32>, i32 -> vector<16x16x4xf32>
    %5 = vector.extract_strided_slice %2 {offsets = [1, 0, 0], sizes = [1, 1, 4], strides = [1, 1, 1]} : vector<3x3x4xf32> to vector<1x1x4xf32>
    %6 = vector.shape_cast %5 : vector<1x1x4xf32> to vector<4xf32>
    %7 = vector.shape_cast %6 : vector<4xf32> to vector<1x1x4xf32>
    %8 = vector.broadcast %7 : vector<1x1x4xf32> to vector<16x16x4xf32>
    %9 = arith.mulf %3, %8 : vector<16x16x4xf32>
    %10 = vector.extract_strided_slice %2 {offsets = [1, 1, 0], sizes = [1, 1, 4], strides = [1, 1, 1]} : vector<3x3x4xf32> to vector<1x1x4xf32>
    %11 = vector.shape_cast %10 : vector<1x1x4xf32> to vector<4xf32>
    %12 = vector.shape_cast %11 : vector<4xf32> to vector<1x1x4xf32>
    %13 = vector.broadcast %12 : vector<1x1x4xf32> to vector<16x16x4xf32>
    %14 = arith.mulf %1, %13 : vector<16x16x4xf32>
    %15 = arith.addf %9, %14 : vector<16x16x4xf32>
    %16 = vector.extract_strided_slice %2 {offsets = [1, 2, 0], sizes = [1, 1, 4], strides = [1, 1, 1]} : vector<3x3x4xf32> to vector<1x1x4xf32>
    %17 = vector.shape_cast %16 : vector<1x1x4xf32> to vector<4xf32>
    %18 = vector.shape_cast %17 : vector<4xf32> to vector<1x1x4xf32>
    %19 = vector.broadcast %18 : vector<1x1x4xf32> to vector<16x16x4xf32>
    %20 = arith.mulf %4, %19 : vector<16x16x4xf32>
    %21 = arith.addf %15, %20 : vector<16x16x4xf32>
    %c0_6 = arith.constant 0 : index
    %c0_7 = arith.constant 0 : index
    %c0_8 = arith.constant 0 : index
    %22 = vector.load %arg9[%c0_6, %c0_7, %c0_8] : memref<16x16x4xf32, #tpu.memory_space<vmem>>, vector<16x16x4xf32>
    tpu.vector_store %arg9[%c0_6, %c0_7, %c0_8], %21 {strides = array<i32>} : memref<16x16x4xf32, #tpu.memory_space<vmem>>, vector<16x16x4xf32>,
    %c1 = arith.constant 1 : index
    %c0_9 = arith.constant 0 : index
    %c0_10 = arith.constant 0 : index
    %23 = vector.load %arg9[%c1, %c0_9, %c0_10] : memref<16x16x4xf32, #tpu.memory_space<vmem>>, vector<15x16x4xf32>
    %24 = vector.extract_strided_slice %3 {offsets = [0, 0, 0], sizes = [15, 16, 4], strides = [1, 1, 1]} : vector<16x16x4xf32> to vector<15x16x4xf32>
    %25 = vector.extract_strided_slice %2 {offsets = [0, 0, 0], sizes = [1, 1, 4], strides = [1, 1, 1]} : vector<3x3x4xf32> to vector<1x1x4xf32>
    %26 = vector.shape_cast %25 : vector<1x1x4xf32> to vector<4xf32>
    %27 = vector.shape_cast %26 : vector<4xf32> to vector<1x1x4xf32>
    %28 = vector.broadcast %27 : vector<1x1x4xf32> to vector<15x16x4xf32>
    %29 = arith.mulf %24, %28 : vector<15x16x4xf32>
    %30 = arith.addf %23, %29 : vector<15x16x4xf32>
    %31 = vector.extract_strided_slice %1 {offsets = [0, 0, 0], sizes = [15, 16, 4], strides = [1, 1, 1]} : vector<16x16x4xf32> to vector<15x16x4xf32>
    %32 = vector.extract_strided_slice %2 {offsets = [0, 1, 0], sizes = [1, 1, 4], strides = [1, 1, 1]} : vector<3x3x4xf32> to vector<1x1x4xf32>
    %33 = vector.shape_cast %32 : vector<1x1x4xf32> to vector<4xf32>
    %34 = vector.shape_cast %33 : vector<4xf32> to vector<1x1x4xf32>
    %35 = vector.broadcast %34 : vector<1x1x4xf32> to vector<15x16x4xf32>
    %36 = arith.mulf %31, %35 : vector<15x16x4xf32>
    %37 = arith.addf %30, %36 : vector<15x16x4xf32>
    %38 = vector.extract_strided_slice %4 {offsets = [0, 0, 0], sizes = [15, 16, 4], strides = [1, 1, 1]} : vector<16x16x4xf32> to vector<15x16x4xf32>
    %39 = vector.extract_strided_slice %2 {offsets = [0, 2, 0], sizes = [1, 1, 4], strides = [1, 1, 1]} : vector<3x3x4xf32> to vector<1x1x4xf32>
    %40 = vector.shape_cast %39 : vector<1x1x4xf32> to vector<4xf32>
    %41 = vector.shape_cast %40 : vector<4xf32> to vector<1x1x4xf32>
    %42 = vector.broadcast %41 : vector<1x1x4xf32> to vector<15x16x4xf32>
    %43 = arith.mulf %38, %42 : vector<15x16x4xf32>
    %44 = arith.addf %37, %43 : vector<15x16x4xf32>
    %c1_11 = arith.constant 1 : index
    %c0_12 = arith.constant 0 : index
    %c0_13 = arith.constant 0 : index
    %45 = vector.load %arg9[%c1_11, %c0_12, %c0_13] : memref<16x16x4xf32, #tpu.memory_space<vmem>>, vector<15x16x4xf32>
    tpu.vector_store %arg9[%c1_11, %c0_12, %c0_13], %44 {strides = array<i32>} : memref<16x16x4xf32, #tpu.memory_space<vmem>>, vector<15x16x4xf32>,
    %c0_14 = arith.constant 0 : index
    %c0_15 = arith.constant 0 : index
    %c0_16 = arith.constant 0 : index
    %46 = vector.load %arg9[%c0_14, %c0_15, %c0_16] : memref<16x16x4xf32, #tpu.memory_space<vmem>>, vector<15x16x4xf32>
    %47 = vector.extract_strided_slice %3 {offsets = [1, 0, 0], sizes = [15, 16, 4], strides = [1, 1, 1]} : vector<16x16x4xf32> to vector<15x16x4xf32>
    %48 = vector.extract_strided_slice %2 {offsets = [2, 0, 0], sizes = [1, 1, 4], strides = [1, 1, 1]} : vector<3x3x4xf32> to vector<1x1x4xf32>
    %49 = vector.shape_cast %48 : vector<1x1x4xf32> to vector<4xf32>
    %50 = vector.shape_cast %49 : vector<4xf32> to vector<1x1x4xf32>
    %51 = vector.broadcast %50 : vector<1x1x4xf32> to vector<15x16x4xf32>
    %52 = arith.mulf %47, %51 : vector<15x16x4xf32>
    %53 = arith.addf %46, %52 : vector<15x16x4xf32>
    %54 = vector.extract_strided_slice %1 {offsets = [1, 0, 0], sizes = [15, 16, 4], strides = [1, 1, 1]} : vector<16x16x4xf32> to vector<15x16x4xf32>
    %55 = vector.extract_strided_slice %2 {offsets = [2, 1, 0], sizes = [1, 1, 4], strides = [1, 1, 1]} : vector<3x3x4xf32> to vector<1x1x4xf32>
    %56 = vector.shape_cast %55 : vector<1x1x4xf32> to vector<4xf32>
    %57 = vector.shape_cast %56 : vector<4xf32> to vector<1x1x4xf32>
    %58 = vector.broadcast %57 : vector<1x1x4xf32> to vector<15x16x4xf32>
    %59 = arith.mulf %54, %58 : vector<15x16x4xf32>
    %60 = arith.addf %53, %59 : vector<15x16x4xf32>
    %61 = vector.extract_strided_slice %4 {offsets = [1, 0, 0], sizes = [15, 16, 4], strides = [1, 1, 1]} : vector<16x16x4xf32> to vector<15x16x4xf32>
    %62 = vector.extract_strided_slice %2 {offsets = [2, 2, 0], sizes = [1, 1, 4], strides = [1, 1, 1]} : vector<3x3x4xf32> to vector<1x1x4xf32>
    %63 = vector.shape_cast %62 : vector<1x1x4xf32> to vector<4xf32>
    %64 = vector.shape_cast %63 : vector<4xf32> to vector<1x1x4xf32>
    %65 = vector.broadcast %64 : vector<1x1x4xf32> to vector<15x16x4xf32>
    %66 = arith.mulf %61, %65 : vector<15x16x4xf32>
    %67 = arith.addf %60, %66 : vector<15x16x4xf32>
    %c0_17 = arith.constant 0 : index
    %c0_18 = arith.constant 0 : index
    %c0_19 = arith.constant 0 : index
    %68 = vector.load %arg9[%c0_17, %c0_18, %c0_19] : memref<16x16x4xf32, #tpu.memory_space<vmem>>, vector<15x16x4xf32>
    tpu.vector_store %arg9[%c0_17, %c0_18, %c0_19], %67 {strides = array<i32>} : memref<16x16x4xf32, #tpu.memory_space<vmem>>, vector<15x16x4xf32>,
    %c0_20 = arith.constant 0 : index
    %c0_21 = arith.constant 0 : index
    %c0_22 = arith.constant 0 : index
    %c0_23 = arith.constant 0 : index
    %69 = vector.load %arg4[%c0_20, %c0_21, %c0_22, %c0_23] : memref<1x1x16x4xf32, #tpu.memory_space<vmem>>, vector<1x1x16x4xf32>
    %70 = vector.shape_cast %69 : vector<1x1x16x4xf32> to vector<1x16x4xf32>
    %c0_i32 = arith.constant 0 : i32
    %71 = arith.cmpi sgt, %arg2, %c0_i32 : i32
    %72 = arith.extui %71 : i1 to i32
    %73 = arith.sitofp %72 : i32 to f32
    %74 = vector.broadcast %73 : f32 to vector<1x16x4xf32>
    %75 = arith.mulf %70, %74 : vector<1x16x4xf32>
    %c0_24 = arith.constant 0 : index
    %c0_25 = arith.constant 0 : index
    %c0_26 = arith.constant 0 : index
    %c0_27 = arith.constant 0 : index
    %76 = vector.load %arg5[%c0_24, %c0_25, %c0_26, %c0_27] : memref<1x1x16x4xf32, #tpu.memory_space<vmem>>, vector<1x1x16x4xf32>
    %77 = vector.shape_cast %76 : vector<1x1x16x4xf32> to vector<1x16x4xf32>
    %c0_i32_28 = arith.constant 0 : i32
    %78 = arith.cmpi slt, %arg2, %c0_i32_28 : i32
    %79 = arith.extui %78 : i1 to i32
    %80 = arith.sitofp %79 : i32 to f32
    %81 = vector.broadcast %80 : f32 to vector<1x16x4xf32>
    %82 = arith.mulf %77, %81 : vector<1x16x4xf32>
    %c1_i32_29 = arith.constant 1 : i32
    %83 = tpu.dynamic_rotate %75 by %c1_i32_29 dim 1 : vector<1x16x4xf32>, i32 -> vector<1x16x4xf32>
    %c15_i32_30 = arith.constant 15 : i32
    %84 = tpu.dynamic_rotate %75 by %c15_i32_30 dim 1 : vector<1x16x4xf32>, i32 -> vector<1x16x4xf32>
    %c1_i32_31 = arith.constant 1 : i32
    %85 = tpu.dynamic_rotate %82 by %c1_i32_31 dim 1 : vector<1x16x4xf32>, i32 -> vector<1x16x4xf32>
    %c15_i32_32 = arith.constant 15 : i32
    %86 = tpu.dynamic_rotate %82 by %c15_i32_32 dim 1 : vector<1x16x4xf32>, i32 -> vector<1x16x4xf32>
    %c0_33 = arith.constant 0 : index
    %c0_34 = arith.constant 0 : index
    %c0_35 = arith.constant 0 : index
    %87 = vector.load %arg9[%c0_33, %c0_34, %c0_35] : memref<16x16x4xf32, #tpu.memory_space<vmem>>, vector<1x16x4xf32>
    %88 = vector.extract_strided_slice %2 {offsets = [0, 0, 0], sizes = [1, 1, 4], strides = [1, 1, 1]} : vector<3x3x4xf32> to vector<1x1x4xf32>
    %89 = vector.shape_cast %88 : vector<1x1x4xf32> to vector<4xf32>
    %90 = vector.shape_cast %89 : vector<4xf32> to vector<1x1x4xf32>
    %91 = vector.broadcast %90 : vector<1x1x4xf32> to vector<1x16x4xf32>
    %92 = arith.mulf %83, %91 : vector<1x16x4xf32>
    %93 = arith.addf %87, %92 : vector<1x16x4xf32>
    %94 = vector.extract_strided_slice %2 {offsets = [0, 1, 0], sizes = [1, 1, 4], strides = [1, 1, 1]} : vector<3x3x4xf32> to vector<1x1x4xf32>
    %95 = vector.shape_cast %94 : vector<1x1x4xf32> to vector<4xf32>
    %96 = vector.shape_cast %95 : vector<4xf32> to vector<1x1x4xf32>
    %97 = vector.broadcast %96 : vector<1x1x4xf32> to vector<1x16x4xf32>
    %98 = arith.mulf %75, %97 : vector<1x16x4xf32>
    %99 = arith.addf %93, %98 : vector<1x16x4xf32>
    %100 = vector.extract_strided_slice %2 {offsets = [0, 2, 0], sizes = [1, 1, 4], strides = [1, 1, 1]} : vector<3x3x4xf32> to vector<1x1x4xf32>
    %101 = vector.shape_cast %100 : vector<1x1x4xf32> to vector<4xf32>
    %102 = vector.shape_cast %101 : vector<4xf32> to vector<1x1x4xf32>
    %103 = vector.broadcast %102 : vector<1x1x4xf32> to vector<1x16x4xf32>
    %104 = arith.mulf %84, %103 : vector<1x16x4xf32>
    %105 = arith.addf %99, %104 : vector<1x16x4xf32>
    %c0_36 = arith.constant 0 : index
    %c0_37 = arith.constant 0 : index
    %c0_38 = arith.constant 0 : index
    %106 = vector.load %arg9[%c0_36, %c0_37, %c0_38] : memref<16x16x4xf32, #tpu.memory_space<vmem>>, vector<1x16x4xf32>
    tpu.vector_store %arg9[%c0_36, %c0_37, %c0_38], %105 {strides = array<i32>} : memref<16x16x4xf32, #tpu.memory_space<vmem>>, vector<1x16x4xf32>,
    %c15 = arith.constant 15 : index
    %c0_39 = arith.constant 0 : index
    %c0_40 = arith.constant 0 : index
    %107 = vector.load %arg9[%c15, %c0_39, %c0_40] : memref<16x16x4xf32, #tpu.memory_space<vmem>>, vector<1x16x4xf32>
    %108 = vector.extract_strided_slice %2 {offsets = [2, 0, 0], sizes = [1, 1, 4], strides = [1, 1, 1]} : vector<3x3x4xf32> to vector<1x1x4xf32>
    %109 = vector.shape_cast %108 : vector<1x1x4xf32> to vector<4xf32>
    %110 = vector.shape_cast %109 : vector<4xf32> to vector<1x1x4xf32>
    %111 = vector.broadcast %110 : vector<1x1x4xf32> to vector<1x16x4xf32>
    %112 = arith.mulf %85, %111 : vector<1x16x4xf32>
    %113 = arith.addf %107, %112 : vector<1x16x4xf32>
    %114 = vector.extract_strided_slice %2 {offsets = [2, 1, 0], sizes = [1, 1, 4], strides = [1, 1, 1]} : vector<3x3x4xf32> to vector<1x1x4xf32>
    %115 = vector.shape_cast %114 : vector<1x1x4xf32> to vector<4xf32>
    %116 = vector.shape_cast %115 : vector<4xf32> to vector<1x1x4xf32>
    %117 = vector.broadcast %116 : vector<1x1x4xf32> to vector<1x16x4xf32>
    %118 = arith.mulf %82, %117 : vector<1x16x4xf32>
    %119 = arith.addf %113, %118 : vector<1x16x4xf32>
    %120 = vector.extract_strided_slice %2 {offsets = [2, 2, 0], sizes = [1, 1, 4], strides = [1, 1, 1]} : vector<3x3x4xf32> to vector<1x1x4xf32>
    %121 = vector.shape_cast %120 : vector<1x1x4xf32> to vector<4xf32>
    %122 = vector.shape_cast %121 : vector<4xf32> to vector<1x1x4xf32>
    %123 = vector.broadcast %122 : vector<1x1x4xf32> to vector<1x16x4xf32>
    %124 = arith.mulf %86, %123 : vector<1x16x4xf32>
    %125 = arith.addf %119, %124 : vector<1x16x4xf32>
    %c15_41 = arith.constant 15 : index
    %c0_42 = arith.constant 0 : index
    %c0_43 = arith.constant 0 : index
    %126 = vector.load %arg9[%c15_41, %c0_42, %c0_43] : memref<16x16x4xf32, #tpu.memory_space<vmem>>, vector<1x16x4xf32>
    tpu.vector_store %arg9[%c15_41, %c0_42, %c0_43], %125 {strides = array<i32>} : memref<16x16x4xf32, #tpu.memory_space<vmem>>, vector<1x16x4xf32>,
    %127 = vector.extract_strided_slice %75 {offsets = [0, 15, 0], sizes = [1, 1, 4], strides = [1, 1, 1]} : vector<1x16x4xf32> to vector<1x1x4xf32>
    %128 = vector.extract_strided_slice %1 {offsets = [0, 15, 0], sizes = [16, 1, 4], strides = [1, 1, 1]} : vector<16x16x4xf32> to vector<16x1x4xf32>
    %129 = vector.extract_strided_slice %82 {offsets = [0, 15, 0], sizes = [1, 1, 4], strides = [1, 1, 1]} : vector<1x16x4xf32> to vector<1x1x4xf32>
    %130 = tpu.concatenate %127, %128, %129 in 0 : vector<1x1x4xf32>, vector<16x1x4xf32>, vector<1x1x4xf32> -> vector<18x1x4xf32>
    %131 = vector.extract_strided_slice %75 {offsets = [0, 0, 0], sizes = [1, 1, 4], strides = [1, 1, 1]} : vector<1x16x4xf32> to vector<1x1x4xf32>
    %132 = vector.extract_strided_slice %1 {offsets = [0, 0, 0], sizes = [16, 1, 4], strides = [1, 1, 1]} : vector<16x16x4xf32> to vector<16x1x4xf32>
    %133 = vector.extract_strided_slice %82 {offsets = [0, 0, 0], sizes = [1, 1, 4], strides = [1, 1, 1]} : vector<1x16x4xf32> to vector<1x1x4xf32>
    %134 = tpu.concatenate %131, %132, %133 in 0 : vector<1x1x4xf32>, vector<16x1x4xf32>, vector<1x1x4xf32> -> vector<18x1x4xf32>
    %135 = vector.extract_strided_slice %130 {offsets = [0, 0, 0], sizes = [16, 1, 4], strides = [1, 1, 1]} : vector<18x1x4xf32> to vector<16x1x4xf32>
    %136 = vector.extract_strided_slice %2 {offsets = [0, 0, 0], sizes = [1, 1, 4], strides = [1, 1, 1]} : vector<3x3x4xf32> to vector<1x1x4xf32>
    %137 = vector.shape_cast %136 : vector<1x1x4xf32> to vector<4xf32>
    %138 = vector.shape_cast %137 : vector<4xf32> to vector<1x1x4xf32>
    %139 = vector.broadcast %138 : vector<1x1x4xf32> to vector<16x1x4xf32>
    %140 = arith.mulf %135, %139 : vector<16x1x4xf32>
    %141 = vector.extract_strided_slice %130 {offsets = [1, 0, 0], sizes = [16, 1, 4], strides = [1, 1, 1]} : vector<18x1x4xf32> to vector<16x1x4xf32>
    %142 = vector.extract_strided_slice %2 {offsets = [1, 0, 0], sizes = [1, 1, 4], strides = [1, 1, 1]} : vector<3x3x4xf32> to vector<1x1x4xf32>
    %143 = vector.shape_cast %142 : vector<1x1x4xf32> to vector<4xf32>
    %144 = vector.shape_cast %143 : vector<4xf32> to vector<1x1x4xf32>
    %145 = vector.broadcast %144 : vector<1x1x4xf32> to vector<16x1x4xf32>
    %146 = arith.mulf %141, %145 : vector<16x1x4xf32>
    %147 = arith.addf %140, %146 : vector<16x1x4xf32>
    %148 = vector.extract_strided_slice %130 {offsets = [2, 0, 0], sizes = [16, 1, 4], strides = [1, 1, 1]} : vector<18x1x4xf32> to vector<16x1x4xf32>
    %149 = vector.extract_strided_slice %2 {offsets = [2, 0, 0], sizes = [1, 1, 4], strides = [1, 1, 1]} : vector<3x3x4xf32> to vector<1x1x4xf32>
    %150 = vector.shape_cast %149 : vector<1x1x4xf32> to vector<4xf32>
    %151 = vector.shape_cast %150 : vector<4xf32> to vector<1x1x4xf32>
    %152 = vector.broadcast %151 : vector<1x1x4xf32> to vector<16x1x4xf32>
    %153 = arith.mulf %148, %152 : vector<16x1x4xf32>
    %154 = arith.addf %147, %153 : vector<16x1x4xf32>
    %155 = vector.extract_strided_slice %134 {offsets = [0, 0, 0], sizes = [16, 1, 4], strides = [1, 1, 1]} : vector<18x1x4xf32> to vector<16x1x4xf32>
    %156 = vector.extract_strided_slice %2 {offsets = [0, 2, 0], sizes = [1, 1, 4], strides = [1, 1, 1]} : vector<3x3x4xf32> to vector<1x1x4xf32>
    %157 = vector.shape_cast %156 : vector<1x1x4xf32> to vector<4xf32>
    %158 = vector.shape_cast %157 : vector<4xf32> to vector<1x1x4xf32>
    %159 = vector.broadcast %158 : vector<1x1x4xf32> to vector<16x1x4xf32>
    %160 = arith.mulf %155, %159 : vector<16x1x4xf32>
    %161 = vector.extract_strided_slice %134 {offsets = [1, 0, 0], sizes = [16, 1, 4], strides = [1, 1, 1]} : vector<18x1x4xf32> to vector<16x1x4xf32>
    %162 = vector.extract_strided_slice %2 {offsets = [1, 2, 0], sizes = [1, 1, 4], strides = [1, 1, 1]} : vector<3x3x4xf32> to vector<1x1x4xf32>
    %163 = vector.shape_cast %162 : vector<1x1x4xf32> to vector<4xf32>
    %164 = vector.shape_cast %163 : vector<4xf32> to vector<1x1x4xf32>
    %165 = vector.broadcast %164 : vector<1x1x4xf32> to vector<16x1x4xf32>
    %166 = arith.mulf %161, %165 : vector<16x1x4xf32>
    %167 = arith.addf %160, %166 : vector<16x1x4xf32>
    %168 = vector.extract_strided_slice %134 {offsets = [2, 0, 0], sizes = [16, 1, 4], strides = [1, 1, 1]} : vector<18x1x4xf32> to vector<16x1x4xf32>
    %169 = vector.extract_strided_slice %2 {offsets = [2, 2, 0], sizes = [1, 1, 4], strides = [1, 1, 1]} : vector<3x3x4xf32> to vector<1x1x4xf32>
    %170 = vector.shape_cast %169 : vector<1x1x4xf32> to vector<4xf32>
    %171 = vector.shape_cast %170 : vector<4xf32> to vector<1x1x4xf32>
    %172 = vector.broadcast %171 : vector<1x1x4xf32> to vector<16x1x4xf32>
    %173 = arith.mulf %168, %172 : vector<16x1x4xf32>
    %174 = arith.addf %167, %173 : vector<16x1x4xf32>
    %c0_44 = arith.constant 0 : index
    %c0_45 = arith.constant 0 : index
    %c0_46 = arith.constant 0 : index
    %175 = vector.load %arg9[%c0_44, %c0_45, %c0_46] : memref<16x16x4xf32, #tpu.memory_space<vmem>>, vector<16x1x4xf32>
    %176 = arith.subf %175, %154 : vector<16x1x4xf32>
    %c0_47 = arith.constant 0 : index
    %c0_48 = arith.constant 0 : index
    %c0_49 = arith.constant 0 : index
    %177 = vector.load %arg9[%c0_47, %c0_48, %c0_49] : memref<16x16x4xf32, #tpu.memory_space<vmem>>, vector<16x1x4xf32>
    tpu.vector_store %arg9[%c0_47, %c0_48, %c0_49], %176 {strides = array<i32>} : memref<16x16x4xf32, #tpu.memory_space<vmem>>, vector<16x1x4xf32>,
    %c0_50 = arith.constant 0 : index
    %c15_51 = arith.constant 15 : index
    %c0_52 = arith.constant 0 : index
    %178 = vector.load %arg9[%c0_50, %c15_51, %c0_52] : memref<16x16x4xf32, #tpu.memory_space<vmem>>, vector<16x1x4xf32>
    %179 = arith.subf %178, %174 : vector<16x1x4xf32>
    %c0_53 = arith.constant 0 : index
    %c15_54 = arith.constant 15 : index
    %c0_55 = arith.constant 0 : index
    %180 = vector.load %arg9[%c0_53, %c15_54, %c0_55] : memref<16x16x4xf32, #tpu.memory_space<vmem>>, vector<16x1x4xf32>
    tpu.vector_store %arg9[%c0_53, %c15_54, %c0_55], %179 {strides = array<i32>} : memref<16x16x4xf32, #tpu.memory_space<vmem>>, vector<16x1x4xf32>,
    %c0_56 = arith.constant 0 : index
    %c0_57 = arith.constant 0 : index
    %c0_58 = arith.constant 0 : index
    %181 = vector.load %arg9[%c0_56, %c0_57, %c0_58] : memref<16x16x4xf32, #tpu.memory_space<vmem>>, vector<16x16x4xf32>
    %c0_59 = arith.constant 0 : index
    %c0_60 = arith.constant 0 : index
    %182 = vector.load %arg7[%c0_59, %c0_60] : memref<1x4xf32, #tpu.memory_space<vmem>>, vector<1x4xf32>
    %183 = vector.shape_cast %182 : vector<1x4xf32> to vector<4xf32>
    %184 = vector.shape_cast %183 : vector<4xf32> to vector<1x1x4xf32>
    %185 = vector.broadcast %184 : vector<1x1x4xf32> to vector<16x16x4xf32>
    %186 = arith.addf %181, %185 : vector<16x16x4xf32>
    %cst = arith.constant 0.000000e+00 : f32
    %187 = vector.broadcast %cst : f32 to vector<16x16x4xf32>
    %188 = arith.maximumf %186, %187 : vector<16x16x4xf32>
    %c0_61 = arith.constant 0 : index
    %c0_62 = arith.constant 0 : index
    %c0_63 = arith.constant 0 : index
    %c0_64 = arith.constant 0 : index
    %189 = vector.load %arg8[%c0_61, %c0_62, %c0_63, %c0_64] : memref<1x16x16x4xf32, #tpu.memory_space<vmem>>, vector<1x16x16x4xf32>
    %190 = vector.shape_cast %189 : vector<1x16x16x4xf32> to vector<16x16x4xf32>
    %191 = vector.shape_cast %188 : vector<16x16x4xf32> to vector<1x16x16x4xf32>
    tpu.vector_store %arg8[%c0_61, %c0_62, %c0_63, %c0_64], %191 {strides = array<i32>} : memref<1x16x16x4xf32, #tpu.memory_space<vmem>>, vector<1x16x16x4xf32>,
    return
  }
  func.func @transform_0(%arg0: i32, %arg1: i32, %arg2: i32) -> (i32, i32, i32, i32) {
    %c0_i32 = arith.constant 0 : i32
    %c0_i32_0 = arith.constant 0 : i32
    return %arg1, %arg2, %c0_i32, %arg0 : i32, i32, i32, i32
  }
  func.func @transform_1(%arg0: i32, %arg1: i32, %arg2: i32) -> (i32, i32, i32, i32) {
    %c16_i32 = arith.constant 16 : i32
    %0 = arith.muli %arg2, %c16_i32 : i32
    %c1_i32 = arith.constant 1 : i32
    %1 = arith.subi %0, %c1_i32 : i32
    %c0_i32 = arith.constant 0 : i32
    %2 = arith.maxsi %1, %c0_i32 : i32
    %c0_i32_0 = arith.constant 0 : i32
    %c0_i32_1 = arith.constant 0 : i32
    return %arg1, %2, %c0_i32_0, %arg0 : i32, i32, i32, i32
  }
  func.func @transform_2(%arg0: i32, %arg1: i32, %arg2: i32) -> (i32, i32, i32, i32) {
    %c16_i32 = arith.constant 16 : i32
    %0 = arith.muli %arg2, %c16_i32 : i32
    %c16_i32_0 = arith.constant 16 : i32
    %1 = arith.addi %0, %c16_i32_0 : i32
    %c15_i32 = arith.constant 15 : i32
    %2 = arith.minsi %1, %c15_i32 : i32
    %c0_i32 = arith.constant 0 : i32
    %c0_i32_1 = arith.constant 0 : i32
    return %arg1, %2, %c0_i32, %arg0 : i32, i32, i32, i32
  }
  func.func @transform_3(%arg0: i32, %arg1: i32, %arg2: i32) -> (i32, i32, i32) {
    %c0_i32 = arith.constant 0 : i32
    %c0_i32_0 = arith.constant 0 : i32
    %c0_i32_1 = arith.constant 0 : i32
    return %c0_i32, %c0_i32_0, %arg0 : i32, i32, i32
  }
  func.func @transform_4(%arg0: i32, %arg1: i32, %arg2: i32) -> (i32, i32) {
    %c0_i32 = arith.constant 0 : i32
    %c0_i32_0 = arith.constant 0 : i32
    return %c0_i32, %arg0 : i32, i32
  }
  func.func @transform_5(%arg0: i32, %arg1: i32, %arg2: i32) -> (i32, i32, i32, i32) {
    %c0_i32 = arith.constant 0 : i32
    %c0_i32_0 = arith.constant 0 : i32
    return %arg1, %arg2, %c0_i32, %arg0 : i32, i32, i32, i32
  }
}

</mosaic_0001>

<bundles_post_ra>
// kernel: tpu_custom_call.1
= control target key start
LH: loop header
LB: loop body
LE: loop exit
PB: predicated region body
PF: predicated region fallthrough
CT: control target
= control target key end

     0   :  { %s2193_s18 = smov 0   ;;  %s2195_s19 = smov 0   ;;  %s3798_s0 = inlined_call_operand.vmem [shape: f32[2,16,16,4], index: 0, kind: input, shape index: {}]   ;;  %s3799_s1 = inlined_call_operand.vmem [shape: f32[2,16,16,4], index: 1, kind: input, shape index: {}]   ;;  %s3800_s2 = inlined_call_operand.vmem [shape: f32[2,16,16,4], index: 2, kind: input, shape index: {}]   ;;  %s3801_s3 = inlined_call_operand.vmem [shape: f32[3,3,4], index: 3, kind: input, shape index: {}]   ;;  %s3802_s4 = inlined_call_operand.vmem [shape: f32[1,4], index: 4, kind: input, shape index: {}]   ;;  %s3803_s5 = inlined_call_operand.vmem [shape: f32[2,16,16,4], index: 5, kind: output, shape index: {}]  }
   0x1   :  { %s2197_s20 = smov 0  }
   0x2 LB: > { %s30_s21 = sadd.s32 1, %s2157_s19  ;;  %p2062_p0 = scmp.ge.s32.totalorder %s2161_s20, 1  ;;  %s2161_s20 = sphi %s2197_s20, %s15_s20   ;;  %s2157_s19 = sphi %s2195_s19, %s4065_s19   ;;  %s2153_s18 = sphi %s2193_s18, %s4064_s18  }
   0x3   : > { %p32_p1 = scmp.ge.s32.totalorder %s30_s21, 2  ;;  %p314_p2 = scmp.lt.s32.totalorder %s2161_s20, 3 }
   0x5   : > { %s4067_s21 = smov (%p32_p1, %s30_s21), 0  ;;  %p315_p3 = pnand %p2062_p0, %p314_p2 }
   0x7   : > { %318 = sbr.rel (%p315_p3) target bundleno = 270 (0x10e), region = 40 }
   0xc   : > { %p398_p4 = scmp.lt.s32.totalorder %s2153_s18, 1  ;;  %v539_v0 = vlaneseq  ;;  %v504_v2 = vld [vmem:[%s3801_s3] sm:$0x7]  ;;  %v505_v3 = vld [vmem:[%s3801_s3 + $0x4] sm:$0x7]  ;;  %vm811_vm2 = vcmask 31744  }
   0xd   : > { %v506_v6 = vld [vmem:[%s3801_s3 + $0x8] sm:$0x7]  ;;  %vm1669_vm3 = vcmask 24576  }
   0xe   : > { %s4069_s18 = smov (!%p398_p4, %s2153_s18), 1  ;;  %v2211_v1 = vshrl.u32 %v539_v0, 7 }
   0xf   : > { %s2219_s26 = sshll.u32 %s4069_s18, 8 }
  0x10   : > { %3877 = vst [vmem:[#allocation3_spill] sm:$0xff] %v2211_v1  ;;  %v641_v4 = vsub.s32 0, %v2211_v1  ;;  %v677_v5 = vsub.s32 1, %v2211_v1  ;;  %s2227_s29 = scalar_lea.vmem %s3798_s0, %s2219_s26  ;;  %vm541_vm0 = vcmp.lt.s32.totalorder %v2211_v1, 1  ;;  %vm606_vm1 = vcmp.lt.s32.totalorder %v2211_v1, 7  ;;  %s2077_s7 = sadd.s32 240, %s2219_s26 }
  0x11   : > { %v745_v7 = vsub.s32 2, %v2211_v1  ;;  %v2236_v8 = vld [vmem:[%s2227_s29] sm:$0xff]  ;;  %v2239_v9 = vld [vmem:[%s2227_s29 + $0x8] sm:$0xff]  ;;  %v2262_v22 = vld [vmem:[%s2227_s29 + $0x10] sm:$0xff]  ;;  %s426_s10 = scalar_lea.vmem %s3799_s1, %s2219_s26  ;;  %s3370_s13 = scalar_lea.vmem %s3800_s2, %s2077_s7 }
  0x12   : > { %v2241_v10 = vrot.slane %v505_v3, %v641_v4  ;;  %v2243_v11 = vrot.slane %v505_v3, %v677_v5  ;;  %v2245_v12 = vrot.slane %v504_v2, %v641_v4  ;;  %v2247_v13 = vrot.slane %v504_v2, %v677_v5  ;;  %v2275_v27 = vld [vmem:[%s2227_s29 + $0x18] sm:$0xff]  ;;  %v2320_v52 = vld [vmem:[%s2227_s29 + $0x20] sm:$0xff]  ;;  %v2323_v53 = vld [vmem:[%s2227_s29 + $0x28] sm:$0xff]  ;;  %s3689_s28 = scalar_lea.vmem %s3803_s5, %s2219_s26 }
  0x13   : > { %v507_v14 = vrot.slane %v2236_v8, 7  ;;  %v523_v15 = vrot.slane %v2239_v9, 7  ;;  %v574_v16 = vrot.slane %v2236_v8, 1  ;;  %v590_v17 = vrot.slane %v2239_v9, 1  ;;  %v2344_v62 = vld [vmem:[%s2227_s29 + $0x30] sm:$0xff] }
  0x14   : > { %v679_v18 = vmul.f32 %v2243_v11, %v2236_v8  ;;  %v2255_v19 = vrot.slane %v505_v3, %v745_v7  ;;  %v2257_v20 = vrot.slane %v504_v2, %v745_v7  ;;  %v2259_v21 = vrot.slane %v506_v6, %v641_v4 }
  0x15   : > { %v2266_v23 = vsel %vm541_vm0, %v523_v15, %v507_v14  ;;  %v607_v24 = vsel %vm606_vm1, %v574_v16, %v590_v17  ;;  %v2270_v25 = vrot.slane %v506_v6, %v677_v5  ;;  %v2272_v26 = vrot.slane %v506_v6, %v745_v7 }
  0x16   : > { %3878 = vst [vmem:[#allocation4_spill] sm:$0xff] %v2257_v20  ;;  %3879 = vst [vmem:[#allocation5_spill] sm:$0xff] %v2259_v21  ;;  %v643_v28 = vmul.f32 %v2241_v10, %v2266_v23  ;;  %v747_v29 = vmul.f32 %v2255_v19, %v607_v24  ;;  %v2281_v30 = vmul.f32 %v2257_v20, %v607_v24  ;;  %v508_v35 = vrot.slane %v2262_v22, 7 }
  0x17   : > { %3880 = vst [vmem:[#allocation6_spill] sm:$0xff] %v2270_v25  ;;  %3881 = vst [vmem:[#allocation7_spill] sm:$0xff] %v2272_v26  ;;  %v2285_v31 = vsel %vm541_vm0, %v507_v14, %v523_v15  ;;  %v623_v32 = vsel %vm606_vm1, %v590_v17, %v574_v16  ;;  %v680_v34 = vmul.f32 %v2243_v11, %v2239_v9  ;;  %v524_v39 = vrot.slane %v2275_v27, 7 }
  0x18   : > { %v644_v33 = vmul.f32 %v2241_v10, %v2285_v31  ;;  %v711_v36 = vadd.f32 %v679_v18, %v643_v28  ;;  %v748_v37 = vmul.f32 %v2255_v19, %v623_v32  ;;  %v2296_v38 = vmul.f32 %v2257_v20, %v623_v32  ;;  %v2373_v32 = vld [vmem:[%s2227_s29 + $0x38] sm:$0xff] }
  0x19   : > { %v575_v41 = vrot.slane %v2262_v22, 1  ;;  %v591_v42 = vrot.slane %v2275_v27, 1  ;;  %v681_v43 = vmul.f32 %v2243_v11, %v2262_v22  ;;  %v2305_v45 = vsel %vm541_vm0, %v524_v39, %v508_v35 }
  0x1a   : > { %v712_v40 = vadd.f32 %v680_v34, %v644_v33  ;;  %v779_v44 = vadd.f32 %v747_v29, %v711_v36  ;;  %v2309_v46 = vsel %vm541_vm0, %v508_v35, %v524_v39  ;;  %v682_v47 = vmul.f32 %v2243_v11, %v2275_v27 }
  0x1b   : > { %v608_v49 = vsel %vm606_vm1, %v575_v41, %v591_v42  ;;  %v645_v50 = vmul.f32 %v2241_v10, %v2305_v45  ;;  %v624_v51 = vsel %vm606_vm1, %v591_v42, %v575_v41  ;;  %v646_v57 = vmul.f32 %v2241_v10, %v2309_v46 }
  0x1c   : > { %v780_v48 = vadd.f32 %v748_v37, %v712_v40  ;;  %812 = vst.msk [vmem:[#allocation2] sm:$0xff] %vm811_vm2, %v779_v44  ;;  %v749_v54 = vmul.f32 %v2255_v19, %v608_v49  ;;  %v2328_v55 = vmul.f32 %v2257_v20, %v608_v49  ;;  %v2331_v56 = vmul.f32 %v2272_v26, %v608_v49  ;;  %v2385_v37 = vld [vmem:[%s2227_s29 + $0x40] sm:$0xff] }
  0x1d   : > { %v713_v58 = vadd.f32 %v681_v43, %v645_v50  ;;  %v750_v59 = vmul.f32 %v2255_v19, %v624_v51  ;;  %v2338_v60 = vmul.f32 %v2257_v20, %v624_v51  ;;  %v2341_v61 = vmul.f32 %v2272_v26, %v624_v51 }
  0x1e   : > { %3882 = vst [vmem:[#allocation8_spill] sm:$0xff] %v2331_v56  ;;  %813 = vst.msk [vmem:[#allocation2 + $0x8] sm:$0xff] %vm811_vm2, %v780_v48  ;;  %v714_v63 = vadd.f32 %v682_v47, %v646_v57  ;;  %v509_v0 = vrot.slane %v2320_v52, 7  ;;  %v525_v2 = vrot.slane %v2323_v53, 7  ;;  %v576_v3 = vrot.slane %v2320_v52, 1 }
  0x1f   : > { %3883 = vst [vmem:[#allocation9_spill] sm:$0xff] %v2341_v61  ;;  %v781_v4 = vadd.f32 %v749_v54, %v713_v58  ;;  %v592_v5 = vrot.slane %v2323_v53, 1  ;;  %v683_v6 = vmul.f32 %v2243_v11, %v2320_v52  ;;  %v684_v7 = vmul.f32 %v2243_v11, %v2323_v53 }
  0x20   : > { %v782_v14 = vadd.f32 %v750_v59, %v714_v63  ;;  %v2356_v15 = vsel %vm541_vm0, %v525_v2, %v509_v0  ;;  %v2360_v16 = vsel %vm541_vm0, %v509_v0, %v525_v2  ;;  %v510_v17 = vrot.slane %v2344_v62, 7  ;;  %v2414_v0 = vld [vmem:[%s2227_s29 + $0x48] sm:$0xff] }
  0x21   : > { %814 = vst.msk [vmem:[#allocation2 + $0x10] sm:$0xff] %vm811_vm2, %v781_v4  ;;  %v609_v18 = vsel %vm606_vm1, %v576_v3, %v592_v5  ;;  %v647_v24 = vmul.f32 %v2241_v10, %v2356_v15  ;;  %v625_v28 = vsel %vm606_vm1, %v592_v5, %v576_v3  ;;  %v648_v29 = vmul.f32 %v2241_v10, %v2360_v16 }
  0x22   : > { %815 = vst.msk [vmem:[#allocation2 + $0x18] sm:$0xff] %vm811_vm2, %v782_v14  ;;  %v751_v33 = vmul.f32 %v2255_v19, %v609_v18  ;;  %v2378_v34 = vmul.f32 %v2257_v20, %v609_v18  ;;  %v2381_v35 = vmul.f32 %v2272_v26, %v609_v18  ;;  %v752_v36 = vmul.f32 %v2255_v19, %v625_v28 }
  0x23   : > { %v715_v39 = vadd.f32 %v683_v6, %v647_v24  ;;  %v716_v40 = vadd.f32 %v684_v7, %v648_v29  ;;  %v2388_v41 = vmul.f32 %v2257_v20, %v625_v28  ;;  %v2391_v42 = vmul.f32 %v2272_v26, %v625_v28  ;;  %v2428_v6 = vld [vmem:[%s2227_s29 + $0x50] sm:$0xff] }
  0x24   : > { %3884 = vst [vmem:[#allocation10_spill] sm:$0xff] %v2381_v35  ;;  %v526_v43 = vrot.slane %v2373_v32, 7  ;;  %v577_v44 = vrot.slane %v2344_v62, 1  ;;  %v593_v47 = vrot.slane %v2373_v32, 1  ;;  %v685_v48 = vmul.f32 %v2243_v11, %v2344_v62 }
  0x25   : > { %3885 = vst [vmem:[#allocation11_spill] sm:$0xff] %v2391_v42  ;;  %v783_v49 = vadd.f32 %v751_v33, %v715_v39  ;;  %v784_v50 = vadd.f32 %v752_v36, %v716_v40  ;;  %v686_v51 = vmul.f32 %v2243_v11, %v2373_v32  ;;  %v511_v54 = vrot.slane %v2385_v37, 7 }
  0x26   : > { %v2403_v57 = vsel %vm541_vm0, %v526_v43, %v510_v17  ;;  %v610_v58 = vsel %vm606_vm1, %v577_v44, %v593_v47  ;;  %v2409_v59 = vsel %vm541_vm0, %v510_v17, %v526_v43  ;;  %v626_v63 = vsel %vm606_vm1, %v593_v47, %v577_v44  ;;  %v2447_v43 = vld [vmem:[%s2227_s29 + $0x58] sm:$0xff] }
  0x27   : > { %816 = vst.msk [vmem:[#allocation2 + $0x20] sm:$0xff] %vm811_vm2, %v783_v49  ;;  %817 = vst.msk [vmem:[#allocation2 + $0x28] sm:$0xff] %vm811_vm2, %v784_v50  ;;  %v649_v2 = vmul.f32 %v2241_v10, %v2403_v57  ;;  %v753_v3 = vmul.f32 %v2255_v19, %v610_v58  ;;  %v2422_v4 = vmul.f32 %v2257_v20, %v610_v58  ;;  %v527_v28 = vrot.slane %v2414_v0, 7 }
  0x28   : > { %v2425_v5 = vmul.f32 %v2272_v26, %v610_v58  ;;  %v650_v7 = vmul.f32 %v2241_v10, %v2409_v59  ;;  %v754_v14 = vmul.f32 %v2255_v19, %v626_v63  ;;  %v2434_v17 = vmul.f32 %v2257_v20, %v626_v63 }
  0x29   : > { %v2437_v18 = vmul.f32 %v2272_v26, %v626_v63  ;;  %v717_v24 = vadd.f32 %v685_v48, %v649_v2  ;;  %v578_v29 = vrot.slane %v2385_v37, 1  ;;  %v594_v33 = vrot.slane %v2414_v0, 1 }
  0x2a   : > { %3886 = vst [vmem:[#allocation12_spill] sm:$0xff] %v2425_v5  ;;  %v718_v36 = vadd.f32 %v686_v51, %v650_v7  ;;  %v687_v39 = vmul.f32 %v2243_v11, %v2385_v37  ;;  %v688_v40 = vmul.f32 %v2243_v11, %v2414_v0  ;;  %v512_v44 = vrot.slane %v2428_v6, 7 }
  0x2b   : > { %3887 = vst [vmem:[#allocation13_spill] sm:$0xff] %v2437_v18  ;;  %v785_v47 = vadd.f32 %v753_v3, %v717_v24  ;;  %v2452_v48 = vsel %vm541_vm0, %v527_v28, %v511_v54  ;;  %v611_v49 = vsel %vm606_vm1, %v578_v29, %v594_v33  ;;  %v2458_v50 = vsel %vm541_vm0, %v511_v54, %v527_v28  ;;  %v2507_v18 = vld [vmem:[%s2227_s29 + $0x68] sm:$0xff] }
  0x2c   : > { %v786_v51 = vadd.f32 %v754_v14, %v718_v36  ;;  %v651_v58 = vmul.f32 %v2241_v10, %v2452_v48  ;;  %v755_v63 = vmul.f32 %v2255_v19, %v611_v49  ;;  %v2464_v2 = vmul.f32 %v2257_v20, %v611_v49  ;;  %3891 = vst [vmem:[#allocation17_spill] sm:$0xff] %v2507_v18 }
  0x2d   : > { %818 = vst.msk [vmem:[#allocation2 + $0x30] sm:$0xff] %vm811_vm2, %v785_v47  ;;  %v2468_v3 = vmul.f32 %v2272_v26, %v611_v49  ;;  %v627_v7 = vsel %vm606_vm1, %v594_v33, %v578_v29  ;;  %v652_v54 = vmul.f32 %v2241_v10, %v2458_v50  ;;  %v528_v14 = vrot.slane %v2447_v43, 7 }
  0x2e   : > { %819 = vst.msk [vmem:[#allocation2 + $0x38] sm:$0xff] %vm811_vm2, %v786_v51  ;;  %v719_v24 = vadd.f32 %v687_v39, %v651_v58  ;;  %v756_v28 = vmul.f32 %v2255_v19, %v627_v7  ;;  %v2478_v36 = vmul.f32 %v2257_v20, %v627_v7  ;;  %v2481_v47 = vmul.f32 %v2272_v26, %v627_v7 }
  0x2f   : > { %3888 = vst [vmem:[#allocation14_spill] sm:$0xff] %v2468_v3  ;;  %v720_v49 = vadd.f32 %v688_v40, %v652_v54  ;;  %v2485_v29 = vsel %vm541_vm0, %v528_v14, %v512_v44  ;;  %v579_v33 = vrot.slane %v2428_v6, 1  ;;  %v595_v51 = vrot.slane %v2447_v43, 1 }
  0x30   : > { %3889 = vst [vmem:[#allocation15_spill] sm:$0xff] %v2478_v36  ;;  %3890 = vst [vmem:[#allocation16_spill] sm:$0xff] %v2481_v47  ;;  %v787_v39 = vadd.f32 %v755_v63, %v719_v24  ;;  %v653_v58 = vmul.f32 %v2241_v10, %v2485_v29  ;;  %v689_v3 = vmul.f32 %v2243_v11, %v2428_v6  ;;  %v2504_v24 = vld [vmem:[%s2227_s29 + $0x60] sm:$0xff]  ;;  %v596_v61 = vrot.slane %v2507_v18, 1 }
  0x31   : > { %v2495_v7 = vsel %vm541_vm0, %v512_v44, %v528_v14  ;;  %v788_v40 = vadd.f32 %v756_v28, %v720_v49  ;;  %v612_v54 = vsel %vm606_vm1, %v579_v33, %v595_v51  ;;  %v628_v47 = vsel %vm606_vm1, %v595_v51, %v579_v33 }
  0x32   : > { %v654_v63 = vmul.f32 %v2241_v10, %v2495_v7  ;;  %820 = vst.msk [vmem:[#allocation2 + $0x40] sm:$0xff] %vm811_vm2, %v787_v39  ;;  %v721_v44 = vadd.f32 %v689_v3, %v653_v58  ;;  %v757_v14 = vmul.f32 %v2255_v19, %v612_v54  ;;  %v2512_v28 = vmul.f32 %v2257_v20, %v612_v54  ;;  %v2528_v39 = vld [vmem:[%s2227_s29 + $0x70] sm:$0xff]  ;;  %v2531_v58 = vld [vmem:[%s2227_s29 + $0x78] sm:$0xff] }
  0x33   : > { %v2515_v49 = vmul.f32 %v2272_v26, %v612_v54  ;;  %821 = vst.msk [vmem:[#allocation2 + $0x48] sm:$0xff] %vm811_vm2, %v788_v40  ;;  %v690_v33 = vmul.f32 %v2243_v11, %v2447_v43  ;;  %v758_v51 = vmul.f32 %v2255_v19, %v628_v47  ;;  %v2522_v5 = vmul.f32 %v2257_v20, %v628_v47 }
  0x34   : > { %3892 = vst [vmem:[#allocation18_spill] sm:$0xff] %v2512_v28  ;;  %v2525_v3 = vmul.f32 %v2272_v26, %v628_v47  ;;  %3896 = vst [vmem:[#allocation22_spill] sm:$0xff] %v2528_v39  ;;  %v789_v42 = vadd.f32 %v757_v14, %v721_v44  ;;  %v513_v54 = vrot.slane %v2504_v24, 7  ;;  %v529_v40 = vrot.slane %v2507_v18, 7 }
  0x35   : > { %3893 = vst [vmem:[#allocation19_spill] sm:$0xff] %v2515_v49  ;;  %3894 = vst [vmem:[#allocation20_spill] sm:$0xff] %v2522_v5  ;;  %v580_v49 = vrot.slane %v2504_v24, 1  ;;  %v722_v35 = vadd.f32 %v690_v33, %v654_v63  ;;  %v691_v56 = vmul.f32 %v2243_v11, %v2504_v24  ;;  %v692_v47 = vmul.f32 %v2243_v11, %v2507_v18 }
  0x36   : > { %3895 = vst [vmem:[#allocation21_spill] sm:$0xff] %v2525_v3  ;;  %3897 = vst [vmem:[#allocation23_spill] sm:$0xff] %v2531_v58  ;;  %v2544_v44 = vsel %vm541_vm0, %v529_v40, %v513_v54  ;;  %v2548_v14 = vsel %vm541_vm0, %v513_v54, %v529_v40  ;;  %v514_v63 = vrot.slane %v2528_v39, 7  ;;  %v530_v33 = vrot.slane %v2531_v58, 7 }
  0x37   : > { %822 = vst.msk [vmem:[#allocation2 + $0x50] sm:$0xff] %vm811_vm2, %v789_v42  ;;  %v790_v3 = vadd.f32 %v758_v51, %v722_v35  ;;  %v613_v25 = vsel %vm606_vm1, %v580_v49, %v596_v61  ;;  %v655_v21 = vmul.f32 %v2241_v10, %v2544_v44  ;;  %v629_v42 = vsel %vm606_vm1, %v596_v61, %v580_v49 }
  0x38   : > { %v759_v5 = vmul.f32 %v2255_v19, %v613_v25  ;;  %v2560_v28 = vmul.f32 %v2257_v20, %v613_v25  ;;  %v2563_v54 = vmul.f32 %v2272_v26, %v613_v25  ;;  %v656_v35 = vmul.f32 %v2241_v10, %v2548_v14 }
  0x39   : > { %823 = vst.msk [vmem:[#allocation2 + $0x58] sm:$0xff] %vm811_vm2, %v790_v3  ;;  %v723_v51 = vadd.f32 %v691_v56, %v655_v21  ;;  %v760_v40 = vmul.f32 %v2255_v19, %v629_v42  ;;  %v2570_v61 = vmul.f32 %v2257_v20, %v629_v42  ;;  %v2573_v49 = vmul.f32 %v2272_v26, %v629_v42 }
  0x3a   : > { %3898 = vst [vmem:[#allocation24_spill] sm:$0xff] %v2560_v28  ;;  %3899 = vst [vmem:[#allocation25_spill] sm:$0xff] %v2563_v54  ;;  %v724_v28 = vadd.f32 %v692_v47, %v656_v35  ;;  %v2577_v25 = vsel %vm541_vm0, %v530_v33, %v514_v63  ;;  %v581_v54 = vrot.slane %v2528_v39, 1  ;;  %v597_v3 = vrot.slane %v2531_v58, 1 }
  0x3b   : > { %3900 = vst [vmem:[#allocation26_spill] sm:$0xff] %v2570_v61  ;;  %3901 = vst [vmem:[#allocation27_spill] sm:$0xff] %v2573_v49  ;;  %v791_v21 = vadd.f32 %v759_v5, %v723_v51  ;;  %v657_v56 = vmul.f32 %v2241_v10, %v2577_v25  ;;  %v693_v18 = vmul.f32 %v2243_v11, %v2528_v39  ;;  %v2596_v51 = vld [vmem:[%s2227_s29 + $0x80] sm:$0xff]  ;;  %v2599_v61 = vld [vmem:[%s2227_s29 + $0x88] sm:$0xff] }
  0x3c   : > { %3902 = vst [vmem:[#allocation28_spill] sm:$0xff] %v2577_v25  ;;  %v2587_v42 = vsel %vm541_vm0, %v514_v63, %v530_v33  ;;  %v792_v47 = vadd.f32 %v760_v40, %v724_v28  ;;  %v614_v35 = vsel %vm606_vm1, %v581_v54, %v597_v3  ;;  %v630_v49 = vsel %vm606_vm1, %v597_v3, %v581_v54 }
  0x3d   : > { %3903 = vst [vmem:[#allocation29_spill] sm:$0xff] %v2587_v42  ;;  %v658_v5 = vmul.f32 %v2241_v10, %v2587_v42  ;;  %3904 = vst [vmem:[#allocation30_spill] sm:$0xff] %v2596_v51  ;;  %v725_v63 = vadd.f32 %v693_v18, %v657_v56  ;;  %v761_v28 = vmul.f32 %v2255_v19, %v614_v35  ;;  %v2623_v56 = vld [vmem:[%s2227_s29 + $0x98] sm:$0xff]  ;;  %v598_v39 = vrot.slane %v2599_v61, 1 }
  0x3e   : > { %3905 = vst [vmem:[#allocation31_spill] sm:$0xff] %v2599_v61  ;;  %824 = vst.msk [vmem:[#allocation2 + $0x60] sm:$0xff] %vm811_vm2, %v791_v21  ;;  %v2604_v33 = vmul.f32 %v2257_v20, %v614_v35  ;;  %v2607_v40 = vmul.f32 %v2272_v26, %v614_v35  ;;  %v694_v54 = vmul.f32 %v2243_v11, %v2531_v58  ;;  %v2620_v21 = vld [vmem:[%s2227_s29 + $0x90] sm:$0xff]  ;;  %v515_v35 = vrot.slane %v2596_v51, 7 }
  0x3f   : > { %825 = vst.msk [vmem:[#allocation2 + $0x68] sm:$0xff] %vm811_vm2, %v792_v47  ;;  %v762_v3 = vmul.f32 %v2255_v19, %v630_v49  ;;  %v2614_v42 = vmul.f32 %v2257_v20, %v630_v49  ;;  %v2617_v18 = vmul.f32 %v2272_v26, %v630_v49  ;;  %3910 = vst [vmem:[#allocation36_spill] sm:$0xff] %v2620_v21  ;;  %v531_v47 = vrot.slane %v2599_v61, 7 }
  0x40   : > { %3906 = vst [vmem:[#allocation32_spill] sm:$0xff] %v2604_v33  ;;  %3907 = vst [vmem:[#allocation33_spill] sm:$0xff] %v2607_v40  ;;  %v793_v33 = vadd.f32 %v761_v28, %v725_v63  ;;  %v582_v40 = vrot.slane %v2596_v51, 1  ;;  %v726_v58 = vadd.f32 %v694_v54, %v658_v5  ;;  %v696_v49 = vmul.f32 %v2243_v11, %v2599_v61 }
  0x41   : > { %3908 = vst [vmem:[#allocation34_spill] sm:$0xff] %v2614_v42  ;;  %3909 = vst [vmem:[#allocation35_spill] sm:$0xff] %v2617_v18  ;;  %v695_v42 = vmul.f32 %v2243_v11, %v2596_v51  ;;  %v2636_v63 = vsel %vm541_vm0, %v531_v47, %v515_v35  ;;  %v2640_v28 = vsel %vm541_vm0, %v515_v35, %v531_v47  ;;  %v516_v5 = vrot.slane %v2620_v21, 7 }
  0x42   : > { %3911 = vst [vmem:[#allocation37_spill] sm:$0xff] %v2623_v56  ;;  %826 = vst.msk [vmem:[#allocation2 + $0x70] sm:$0xff] %vm811_vm2, %v793_v33  ;;  %v532_v54 = vrot.slane %v2623_v56, 7  ;;  %v794_v18 = vadd.f32 %v762_v3, %v726_v58  ;;  %v615_v51 = vsel %vm606_vm1, %v582_v40, %v598_v39  ;;  %v659_v61 = vmul.f32 %v2241_v10, %v2636_v63 }
  0x43   : > { %3912 = vst [vmem:[#allocation38_spill] sm:$0xff] %v2636_v63  ;;  %3913 = vst [vmem:[#allocation39_spill] sm:$0xff] %v2640_v28  ;;  %v631_v33 = vsel %vm606_vm1, %v598_v39, %v582_v40  ;;  %v763_v25 = vmul.f32 %v2255_v19, %v615_v51  ;;  %v2652_v36 = vmul.f32 %v2257_v20, %v615_v51 }
  0x44   : > { %v2655_v35 = vmul.f32 %v2272_v26, %v615_v51  ;;  %v660_v58 = vmul.f32 %v2241_v10, %v2640_v28  ;;  %827 = vst.msk [vmem:[#allocation2 + $0x78] sm:$0xff] %vm811_vm2, %v794_v18  ;;  %v727_v3 = vadd.f32 %v695_v42, %v659_v61  ;;  %v764_v47 = vmul.f32 %v2255_v19, %v631_v33 }
  0x45   : > { %3914 = vst [vmem:[#allocation40_spill] sm:$0xff] %v2652_v36  ;;  %v2662_v39 = vmul.f32 %v2257_v20, %v631_v33  ;;  %v2665_v40 = vmul.f32 %v2272_v26, %v631_v33  ;;  %v2669_v51 = vsel %vm541_vm0, %v532_v54, %v516_v5  ;;  %v599_v18 = vrot.slane %v2623_v56, 1 }
  0x46   : > { %3915 = vst [vmem:[#allocation41_spill] sm:$0xff] %v2655_v35  ;;  %v728_v36 = vadd.f32 %v696_v49, %v660_v58  ;;  %3918 = vst [vmem:[#allocation44_spill] sm:$0xff] %v2669_v51  ;;  %v583_v35 = vrot.slane %v2620_v21, 1  ;;  %v795_v61 = vadd.f32 %v763_v25, %v727_v3  ;;  %v661_v42 = vmul.f32 %v2241_v10, %v2669_v51  ;;  %v2688_v3 = vld [vmem:[%s2227_s29 + $0xa0] sm:$0xff] }
  0x47   : > { %3916 = vst [vmem:[#allocation42_spill] sm:$0xff] %v2662_v39  ;;  %3917 = vst [vmem:[#allocation43_spill] sm:$0xff] %v2665_v40  ;;  %v697_v28 = vmul.f32 %v2243_v11, %v2620_v21  ;;  %v2679_v33 = vsel %vm541_vm0, %v516_v5, %v532_v54  ;;  %v2691_v39 = vld [vmem:[%s2227_s29 + $0xa8] sm:$0xff] }
  0x48   : > { %3919 = vst [vmem:[#allocation45_spill] sm:$0xff] %v2679_v33  ;;  %v796_v49 = vadd.f32 %v764_v47, %v728_v36  ;;  %v616_v58 = vsel %vm606_vm1, %v583_v35, %v599_v18  ;;  %v632_v40 = vsel %vm606_vm1, %v599_v18, %v583_v35  ;;  %v662_v25 = vmul.f32 %v2241_v10, %v2679_v33 }
  0x49   : > { %3920 = vst [vmem:[#allocation46_spill] sm:$0xff] %v2688_v3  ;;  %3921 = vst [vmem:[#allocation47_spill] sm:$0xff] %v2691_v39  ;;  %v729_v5 = vadd.f32 %v697_v28, %v661_v42  ;;  %v765_v36 = vmul.f32 %v2255_v19, %v616_v58  ;;  %v2696_v54 = vmul.f32 %v2257_v20, %v616_v58  ;;  %v2715_v42 = vld [vmem:[%s2227_s29 + $0xb8] sm:$0xff]  ;;  %v600_v21 = vrot.slane %v2691_v39, 1 }
  0x4a   : > { %828 = vst.msk [vmem:[#allocation2 + $0x80] sm:$0xff] %vm811_vm2, %v795_v61  ;;  %v2699_v47 = vmul.f32 %v2272_v26, %v616_v58  ;;  %829 = vst.msk [vmem:[#allocation2 + $0x88] sm:$0xff] %vm811_vm2, %v796_v49  ;;  %v698_v35 = vmul.f32 %v2243_v11, %v2623_v56  ;;  %v766_v18 = vmul.f32 %v2255_v19, %v632_v40  ;;  %v2712_v61 = vld [vmem:[%s2227_s29 + $0xb0] sm:$0xff]  ;;  %v517_v58 = vrot.slane %v2688_v3, 7 }
  0x4b   : > { %3922 = vst [vmem:[#allocation48_spill] sm:$0xff] %v2696_v54  ;;  %v2706_v33 = vmul.f32 %v2257_v20, %v632_v40  ;;  %v2709_v28 = vmul.f32 %v2272_v26, %v632_v40  ;;  %3926 = vst [vmem:[#allocation52_spill] sm:$0xff] %v2712_v61  ;;  %v797_v54 = vadd.f32 %v765_v36, %v729_v5  ;;  %v533_v49 = vrot.slane %v2691_v39, 7 }
  0x4c   : > { %3923 = vst [vmem:[#allocation49_spill] sm:$0xff] %v2699_v47  ;;  %3927 = vst [vmem:[#allocation53_spill] sm:$0xff] %v2715_v42  ;;  %v584_v47 = vrot.slane %v2688_v3, 1  ;;  %v730_v56 = vadd.f32 %v698_v35, %v662_v25  ;;  %v700_v40 = vmul.f32 %v2243_v11, %v2691_v39  ;;  %v518_v25 = vrot.slane %v2712_v61, 7 }
  0x4d   : > { %3924 = vst [vmem:[#allocation50_spill] sm:$0xff] %v2706_v33  ;;  %3925 = vst [vmem:[#allocation51_spill] sm:$0xff] %v2709_v28  ;;  %v699_v33 = vmul.f32 %v2243_v11, %v2688_v3  ;;  %v2728_v5 = vsel %vm541_vm0, %v533_v49, %v517_v58  ;;  %v2732_v36 = vsel %vm541_vm0, %v517_v58, %v533_v49  ;;  %v534_v35 = vrot.slane %v2715_v42, 7 }
  0x4e   : > { %830 = vst.msk [vmem:[#allocation2 + $0x90] sm:$0xff] %vm811_vm2, %v797_v54  ;;  %3928 = vst [vmem:[#allocation54_spill] sm:$0xff] %v2728_v5  ;;  %v798_v28 = vadd.f32 %v766_v18, %v730_v56  ;;  %v617_v3 = vsel %vm606_vm1, %v584_v47, %v600_v21  ;;  %v663_v39 = vmul.f32 %v2241_v10, %v2728_v5 }
  0x4f   : > { %3929 = vst [vmem:[#allocation55_spill] sm:$0xff] %v2732_v36  ;;  %v633_v54 = vsel %vm606_vm1, %v600_v21, %v584_v47  ;;  %v767_v51 = vmul.f32 %v2255_v19, %v617_v3  ;;  %v2744_v63 = vmul.f32 %v2257_v20, %v617_v3  ;;  %v2747_v58 = vmul.f32 %v2272_v26, %v617_v3 }
  0x50   : > { %v664_v56 = vmul.f32 %v2241_v10, %v2732_v36  ;;  %831 = vst.msk [vmem:[#allocation2 + $0x98] sm:$0xff] %vm811_vm2, %v798_v28  ;;  %v731_v18 = vadd.f32 %v699_v33, %v663_v39  ;;  %v768_v49 = vmul.f32 %v2255_v19, %v633_v54  ;;  %v2754_v21 = vmul.f32 %v2257_v20, %v633_v54 }
  0x51   : > { %3930 = vst [vmem:[#allocation56_spill] sm:$0xff] %v2744_v63  ;;  %3931 = vst [vmem:[#allocation57_spill] sm:$0xff] %v2747_v58  ;;  %v2757_v47 = vmul.f32 %v2272_v26, %v633_v54  ;;  %v2761_v3 = vsel %vm541_vm0, %v534_v35, %v518_v25  ;;  %v585_v58 = vrot.slane %v2712_v61, 1  ;;  %v601_v28 = vrot.slane %v2715_v42, 1 }
  0x52   : > { %3932 = vst [vmem:[#allocation58_spill] sm:$0xff] %v2754_v21  ;;  %v732_v63 = vadd.f32 %v700_v40, %v664_v56  ;;  %3934 = vst [vmem:[#allocation60_spill] sm:$0xff] %v2761_v3  ;;  %v799_v39 = vadd.f32 %v767_v51, %v731_v18  ;;  %v665_v33 = vmul.f32 %v2241_v10, %v2761_v3  ;;  %v2780_v18 = vld [vmem:[%s2227_s29 + $0xc0] sm:$0xff]  ;;  %v2783_v21 = vld [vmem:[%s2227_s29 + $0xc8] sm:$0xff] }
  0x53   : > { %3933 = vst [vmem:[#allocation59_spill] sm:$0xff] %v2757_v47  ;;  %v701_v36 = vmul.f32 %v2243_v11, %v2712_v61  ;;  %v2771_v54 = vsel %vm541_vm0, %v518_v25, %v534_v35  ;;  %v618_v56 = vsel %vm606_vm1, %v585_v58, %v601_v28  ;;  %v634_v47 = vsel %vm606_vm1, %v601_v28, %v585_v58 }
  0x54   : > { %3935 = vst [vmem:[#allocation61_spill] sm:$0xff] %v2771_v54  ;;  %v800_v40 = vadd.f32 %v768_v49, %v732_v63  ;;  %v666_v51 = vmul.f32 %v2241_v10, %v2771_v54  ;;  %3936 = vst [vmem:[#allocation62_spill] sm:$0xff] %v2780_v18  ;;  %v769_v63 = vmul.f32 %v2255_v19, %v618_v56  ;;  %v602_v61 = vrot.slane %v2783_v21, 1 }
  0x55   : > { %3937 = vst [vmem:[#allocation63_spill] sm:$0xff] %v2783_v21  ;;  %832 = vst.msk [vmem:[#allocation2 + $0xa0] sm:$0xff] %vm811_vm2, %v799_v39  ;;  %v733_v25 = vadd.f32 %v701_v36, %v665_v33  ;;  %v2788_v35 = vmul.f32 %v2257_v20, %v618_v56  ;;  %v2791_v49 = vmul.f32 %v2272_v26, %v618_v56  ;;  %v2804_v39 = vld [vmem:[%s2227_s29 + $0xd0] sm:$0xff]  ;;  %v2807_v33 = vld [vmem:[%s2227_s29 + $0xd8] sm:$0xff]  ;;  %v519_v56 = vrot.slane %v2780_v18, 7 }
  0x56   : > { %833 = vst.msk [vmem:[#allocation2 + $0xa8] sm:$0xff] %vm811_vm2, %v800_v40  ;;  %v702_v58 = vmul.f32 %v2243_v11, %v2715_v42  ;;  %v770_v28 = vmul.f32 %v2255_v19, %v634_v47  ;;  %v2798_v54 = vmul.f32 %v2257_v20, %v634_v47  ;;  %v2801_v36 = vmul.f32 %v2272_v26, %v634_v47 }
  0x57   : > { %3938 = vst [vmem:[#allocation64_spill] sm:$0xff] %v2788_v35  ;;  %3939 = vst [vmem:[#allocation65_spill] sm:$0xff] %v2791_v49  ;;  %v801_v35 = vadd.f32 %v769_v63, %v733_v25  ;;  %v535_v40 = vrot.slane %v2783_v21, 7  ;;  %v586_v49 = vrot.slane %v2780_v18, 1  ;;  %v704_v47 = vmul.f32 %v2243_v11, %v2783_v21 }
  0x58   : > { %3940 = vst [vmem:[#allocation66_spill] sm:$0xff] %v2798_v54  ;;  %3941 = vst [vmem:[#allocation67_spill] sm:$0xff] %v2801_v36  ;;  %v734_v42 = vadd.f32 %v702_v58, %v666_v51  ;;  %v703_v54 = vmul.f32 %v2243_v11, %v2780_v18  ;;  %v520_v51 = vrot.slane %v2804_v39, 7  ;;  %v536_v58 = vrot.slane %v2807_v33, 7 }
  0x59   : > { %3942 = vst [vmem:[#allocation68_spill] sm:$0xff] %v2804_v39  ;;  %3943 = vst [vmem:[#allocation69_spill] sm:$0xff] %v2807_v33  ;;  %v2820_v25 = vsel %vm541_vm0, %v535_v40, %v519_v56  ;;  %v2824_v63 = vsel %vm541_vm0, %v519_v56, %v535_v40  ;;  %v619_v18 = vsel %vm606_vm1, %v586_v49, %v602_v61 }
  0x5a   : > { %834 = vst.msk [vmem:[#allocation2 + $0xb0] sm:$0xff] %vm811_vm2, %v801_v35  ;;  %3944 = vst [vmem:[#allocation70_spill] sm:$0xff] %v2820_v25  ;;  %v802_v36 = vadd.f32 %v770_v28, %v734_v42  ;;  %v667_v21 = vmul.f32 %v2241_v10, %v2820_v25  ;;  %v635_v35 = vsel %vm606_vm1, %v602_v61, %v586_v49 }
  0x5b   : > { %3945 = vst [vmem:[#allocation71_spill] sm:$0xff] %v2824_v63  ;;  %v771_v3 = vmul.f32 %v2255_v19, %v619_v18  ;;  %v2836_v5 = vmul.f32 %v2257_v20, %v619_v18  ;;  %v2839_v56 = vmul.f32 %v2272_v26, %v619_v18  ;;  %v668_v42 = vmul.f32 %v2241_v10, %v2824_v63 }
  0x5c   : > { %835 = vst.msk [vmem:[#allocation2 + $0xb8] sm:$0xff] %vm811_vm2, %v802_v36  ;;  %v735_v28 = vadd.f32 %v703_v54, %v667_v21  ;;  %v772_v40 = vmul.f32 %v2255_v19, %v635_v35  ;;  %v2846_v61 = vmul.f32 %v2257_v20, %v635_v35  ;;  %v2849_v49 = vmul.f32 %v2272_v26, %v635_v35 }
  0x5d   : > { %3946 = vst [vmem:[#allocation72_spill] sm:$0xff] %v2836_v5  ;;  %3947 = vst [vmem:[#allocation73_spill] sm:$0xff] %v2839_v56  ;;  %v736_v5 = vadd.f32 %v704_v47, %v668_v42  ;;  %v2853_v18 = vsel %vm541_vm0, %v536_v58, %v520_v51  ;;  %v587_v56 = vrot.slane %v2804_v39, 1  ;;  %v603_v36 = vrot.slane %v2807_v33, 1 }
  0x5e   : > { %3948 = vst [vmem:[#allocation74_spill] sm:$0xff] %v2846_v61  ;;  %3949 = vst [vmem:[#allocation75_spill] sm:$0xff] %v2849_v49  ;;  %v803_v21 = vadd.f32 %v771_v3, %v735_v28  ;;  %v669_v54 = vmul.f32 %v2241_v10, %v2853_v18  ;;  %v705_v63 = vmul.f32 %v2243_v11, %v2804_v39  ;;  %v2872_v28 = vld [vmem:[%s2227_s29 + $0xe0] sm:$0xff]  ;;  %v2875_v61 = vld [vmem:[%s2227_s29 + $0xe8] sm:$0xff] }
  0x5f   : > { %3950 = vst [vmem:[#allocation76_spill] sm:$0xff] %v2853_v18  ;;  %v2863_v35 = vsel %vm541_vm0, %v520_v51, %v536_v58  ;;  %v804_v47 = vadd.f32 %v772_v40, %v736_v5  ;;  %v620_v42 = vsel %vm606_vm1, %v587_v56, %v603_v36  ;;  %v636_v49 = vsel %vm606_vm1, %v603_v36, %v587_v56 }
  0x60   : > { %3951 = vst [vmem:[#allocation77_spill] sm:$0xff] %v2863_v35  ;;  %v670_v3 = vmul.f32 %v2241_v10, %v2863_v35  ;;  %3952 = vst [vmem:[#allocation78_spill] sm:$0xff] %v2872_v28  ;;  %v737_v51 = vadd.f32 %v705_v63, %v669_v54  ;;  %v773_v5 = vmul.f32 %v2255_v19, %v620_v42  ;;  %v2899_v54 = vld [vmem:[%s2227_s29 + $0xf8] sm:$0xff]  ;;  %v604_v39 = vrot.slane %v2875_v61, 1 }
  0x61   : > { %3953 = vst [vmem:[#allocation79_spill] sm:$0xff] %v2875_v61  ;;  %836 = vst.msk [vmem:[#allocation2 + $0xc0] sm:$0xff] %vm811_vm2, %v803_v21  ;;  %v2880_v58 = vmul.f32 %v2257_v20, %v620_v42  ;;  %v2883_v40 = vmul.f32 %v2272_v26, %v620_v42  ;;  %v706_v56 = vmul.f32 %v2243_v11, %v2807_v33  ;;  %v2896_v21 = vld [vmem:[%s2227_s29 + $0xf0] sm:$0xff]  ;;  %v521_v42 = vrot.slane %v2872_v28, 7 }
  0x62   : > { %837 = vst.msk [vmem:[#allocation2 + $0xc8] sm:$0xff] %vm811_vm2, %v804_v47  ;;  %v774_v36 = vmul.f32 %v2255_v19, %v636_v49  ;;  %v2890_v35 = vmul.f32 %v2257_v20, %v636_v49  ;;  %v2893_v63 = vmul.f32 %v2272_v26, %v636_v49  ;;  %3958 = vst [vmem:[#allocation84_spill] sm:$0xff] %v2896_v21  ;;  %v537_v47 = vrot.slane %v2875_v61, 7 }
  0x63   : > { %3954 = vst [vmem:[#allocation80_spill] sm:$0xff] %v2880_v58  ;;  %3955 = vst [vmem:[#allocation81_spill] sm:$0xff] %v2883_v40  ;;  %v805_v58 = vadd.f32 %v773_v5, %v737_v51  ;;  %v588_v40 = vrot.slane %v2872_v28, 1  ;;  %v738_v33 = vadd.f32 %v706_v56, %v670_v3  ;;  %v708_v49 = vmul.f32 %v2243_v11, %v2875_v61 }
  0x64   : > { %3956 = vst [vmem:[#allocation82_spill] sm:$0xff] %v2890_v35  ;;  %3957 = vst [vmem:[#allocation83_spill] sm:$0xff] %v2893_v63  ;;  %v707_v35 = vmul.f32 %v2243_v11, %v2872_v28  ;;  %v2912_v51 = vsel %vm541_vm0, %v537_v47, %v521_v42  ;;  %v2916_v5 = vsel %vm541_vm0, %v521_v42, %v537_v47  ;;  %v522_v3 = vrot.slane %v2896_v21, 7 }
  0x65   : > { %3959 = vst [vmem:[#allocation85_spill] sm:$0xff] %v2899_v54  ;;  %838 = vst.msk [vmem:[#allocation2 + $0xd0] sm:$0xff] %vm811_vm2, %v805_v58  ;;  %v538_v56 = vrot.slane %v2899_v54, 7  ;;  %v806_v63 = vadd.f32 %v774_v36, %v738_v33  ;;  %v621_v28 = vsel %vm606_vm1, %v588_v40, %v604_v39  ;;  %v671_v61 = vmul.f32 %v2241_v10, %v2912_v51 }
  0x66   : > { %3960 = vst [vmem:[#allocation86_spill] sm:$0xff] %v2912_v51  ;;  %3961 = vst [vmem:[#allocation87_spill] sm:$0xff] %v2916_v5  ;;  %v637_v58 = vsel %vm606_vm1, %v604_v39, %v588_v40  ;;  %v775_v18 = vmul.f32 %v2255_v19, %v621_v28  ;;  %v2928_v25 = vmul.f32 %v2257_v20, %v621_v28 }
  0x67   : > { %v2931_v42 = vmul.f32 %v2272_v26, %v621_v28  ;;  %v672_v33 = vmul.f32 %v2241_v10, %v2916_v5  ;;  %839 = vst.msk [vmem:[#allocation2 + $0xd8] sm:$0xff] %vm811_vm2, %v806_v63  ;;  %v739_v36 = vadd.f32 %v707_v35, %v671_v61  ;;  %v776_v47 = vmul.f32 %v2255_v19, %v637_v58 }
  0x68   : > { %3962 = vst [vmem:[#allocation88_spill] sm:$0xff] %v2928_v25  ;;  %v2938_v51 = vmul.f32 %v2257_v20, %v637_v58  ;;  %v2941_v39 = vmul.f32 %v2272_v26, %v637_v58  ;;  %v2945_v25 = vsel %vm541_vm0, %v538_v56, %v522_v3  ;;  %v589_v28 = vrot.slane %v2896_v21, 1 }
  0x69   : > { %3963 = vst [vmem:[#allocation89_spill] sm:$0xff] %v2931_v42  ;;  %v740_v40 = vadd.f32 %v708_v49, %v672_v33  ;;  %3965 = vst [vmem:[#allocation91_spill] sm:$0xff] %v2945_v25  ;;  %v605_v42 = vrot.slane %v2899_v54, 1  ;;  %v807_v5 = vadd.f32 %v775_v18, %v739_v36  ;;  %v673_v61 = vmul.f32 %v2241_v10, %v2945_v25  ;;  %v4019_v25 = vld [vmem:[#allocation5_spill] sm:$0xff] }
  0x6a   : > { %3964 = vst [vmem:[#allocation90_spill] sm:$0xff] %v2941_v39  ;;  %v709_v35 = vmul.f32 %v2243_v11, %v2896_v21  ;;  %v2955_v63 = vsel %vm541_vm0, %v522_v3, %v538_v56  ;;  %v710_v3 = vmul.f32 %v2243_v11, %v2899_v54  ;;  %v845_v56 = vld [vmem:[#allocation2 + $0x10] sm:$0xff]  ;;  %v880_v11 = vmul.f32 %v2245_v12, %v2285_v31  ;;  %v1097_v21 = vld [vmem:[#allocation2] sm:$0xff] }
  0x6b   : > { %3966 = vst [vmem:[#allocation92_spill] sm:$0xff] %v2955_v63  ;;  %v808_v49 = vadd.f32 %v776_v47, %v740_v40  ;;  %v622_v58 = vsel %vm606_vm1, %v589_v28, %v605_v42  ;;  %v638_v33 = vsel %vm606_vm1, %v605_v42, %v589_v28  ;;  %v674_v18 = vmul.f32 %v2241_v10, %v2955_v63  ;;  %v846_v40 = vld [vmem:[#allocation2 + $0x18] sm:$0xff] }
  0x6c   : > { %840 = vst.msk [vmem:[#allocation2 + $0xe0] sm:$0xff] %vm811_vm2, %v807_v5  ;;  %v741_v36 = vadd.f32 %v709_v35, %v673_v61  ;;  %v777_v20 = vmul.f32 %v2255_v19, %v622_v58  ;;  %v2966_v39 = vmul.f32 %v2272_v26, %v622_v58  ;;  %v778_v47 = vmul.f32 %v2255_v19, %v638_v33  ;;  %v848_v19 = vld [vmem:[#allocation2 + $0x28] sm:$0xff] }
  0x6d   : > { %841 = vst.msk [vmem:[#allocation2 + $0xe8] sm:$0xff] %vm811_vm2, %v808_v49  ;;  %v2973_v42 = vmul.f32 %v2272_v26, %v638_v33  ;;  %v879_v10 = vmul.f32 %v2245_v12, %v2266_v23  ;;  %v943_v5 = vmul.f32 %v2247_v13, %v2236_v8  ;;  %v742_v61 = vadd.f32 %v710_v3, %v674_v18  ;;  %v847_v49 = vld [vmem:[#allocation2 + $0x20] sm:$0xff]  ;;  %v850_v26 = vld [vmem:[#allocation2 + $0x38] sm:$0xff] }
  0x6e   : > { %3967 = vst [vmem:[#allocation93_spill] sm:$0xff] %v2966_v39  ;;  %v809_v28 = vadd.f32 %v777_v20, %v741_v36  ;;  %v944_v35 = vmul.f32 %v2247_v13, %v2239_v9  ;;  %v881_v33 = vmul.f32 %v2245_v12, %v2305_v45  ;;  %v945_v23 = vmul.f32 %v2247_v13, %v2262_v22  ;;  %v849_v20 = vld [vmem:[#allocation2 + $0x30] sm:$0xff]  ;;  %v4016_v54 = vld [vmem:[#allocation87_spill] sm:$0xff] }
  0x6f   : > { %3968 = vst [vmem:[#allocation94_spill] sm:$0xff] %v2973_v42  ;;  %v909_v58 = vadd.f32 %v879_v10, %v845_v56  ;;  %v882_v8 = vmul.f32 %v2245_v12, %v2309_v46  ;;  %v810_v18 = vadd.f32 %v778_v47, %v742_v61  ;;  %v910_v31 = vadd.f32 %v880_v11, %v846_v40  ;;  %v851_v40 = vld [vmem:[#allocation2 + $0x40] sm:$0xff] }
  0x70   : > { %842 = vst.msk [vmem:[#allocation2 + $0xf0] sm:$0xff] %vm811_vm2, %v809_v28  ;;  %v946_v9 = vmul.f32 %v2247_v13, %v2275_v27  ;;  %v883_v36 = vmul.f32 %v2245_v12, %v2356_v15  ;;  %v911_v56 = vadd.f32 %v881_v33, %v847_v49  ;;  %v947_v22 = vmul.f32 %v2247_v13, %v2320_v52 }
  0x71   : > { %v973_v3 = vadd.f32 %v943_v5, %v909_v58  ;;  %v912_v10 = vadd.f32 %v882_v8, %v848_v19  ;;  %843 = vst.msk [vmem:[#allocation2 + $0xf8] sm:$0xff] %vm811_vm2, %v810_v18  ;;  %v974_v42 = vadd.f32 %v944_v35, %v910_v31  ;;  %v884_v47 = vmul.f32 %v2245_v12, %v2360_v16  ;;  %v852_v58 = vld [vmem:[#allocation2 + $0x48] sm:$0xff]  ;;  %v853_v8 = vld [vmem:[#allocation2 + $0x50] sm:$0xff]  ;;  %v855_v18 = vld [vmem:[#allocation2 + $0x60] sm:$0xff] }
  0x72   : > { %v913_v1 = vadd.f32 %v883_v36, %v849_v20  ;;  %v948_v27 = vmul.f32 %v2247_v13, %v2323_v53  ;;  %v975_v5 = vadd.f32 %v945_v23, %v911_v56  ;;  %v885_v11 = vmul.f32 %v2245_v12, %v2403_v57 }
  0x73   : > { %v1037_v28 = vadd.f32 %v2281_v30, %v973_v3  ;;  %v976_v61 = vadd.f32 %v946_v9, %v912_v10  ;;  %v1038_v52 = vadd.f32 %v2296_v38, %v974_v42  ;;  %v914_v19 = vadd.f32 %v884_v47, %v850_v26  ;;  %v854_v42 = vld [vmem:[#allocation2 + $0x58] sm:$0xff] }
  0x74   : > { %v977_v49 = vadd.f32 %v947_v22, %v913_v1  ;;  %v949_v35 = vmul.f32 %v2247_v13, %v2344_v62  ;;  %v1039_v53 = vadd.f32 %v2328_v55, %v975_v5  ;;  %v915_v30 = vadd.f32 %v885_v11, %v851_v40  ;;  %v856_v22 = vld [vmem:[#allocation2 + $0x68] sm:$0xff]  ;;  %v857_v40 = vld [vmem:[#allocation2 + $0x70] sm:$0xff] }
  0x75   : > { %1067 = vst.msk [vmem:[#allocation2 + $0x10] sm:$0xff] %vm811_vm2, %v1037_v28  ;;  %v1040_v33 = vadd.f32 %v2338_v60, %v976_v61  ;;  %v886_v23 = vmul.f32 %v2245_v12, %v2409_v59  ;;  %1068 = vst.msk [vmem:[#allocation2 + $0x18] sm:$0xff] %vm811_vm2, %v1038_v52  ;;  %v978_v26 = vadd.f32 %v948_v27, %v914_v19  ;;  %v858_v61 = vld [vmem:[#allocation2 + $0x78] sm:$0xff]  ;;  %v859_v19 = vld [vmem:[#allocation2 + $0x80] sm:$0xff] }
  0x76   : > { %v1041_v1 = vadd.f32 %v2378_v34, %v977_v49  ;;  %v950_v38 = vmul.f32 %v2247_v13, %v2373_v32  ;;  %v887_v62 = vmul.f32 %v2245_v12, %v2452_v48  ;;  %1069 = vst.msk [vmem:[#allocation2 + $0x20] sm:$0xff] %vm811_vm2, %v1039_v53  ;;  %v979_v55 = vadd.f32 %v949_v35, %v915_v30  ;;  %v3969_v35 = vld [vmem:[#allocation15_spill] sm:$0xff]  ;;  %v3970_v53 = vld [vmem:[#allocation17_spill] sm:$0xff]  ;;  %v3971_v30 = vld [vmem:[#allocation28_spill] sm:$0xff] }
  0x77   : > { %1070 = vst.msk [vmem:[#allocation2 + $0x28] sm:$0xff] %vm811_vm2, %v1040_v33  ;;  %v916_v60 = vadd.f32 %v886_v23, %v852_v58  ;;  %v951_v20 = vmul.f32 %v2247_v13, %v2385_v37  ;;  %v888_v34 = vmul.f32 %v2245_v12, %v2458_v50  ;;  %v1042_v32 = vadd.f32 %v2388_v41, %v978_v26  ;;  %v3973_v26 = vld [vmem:[#allocation22_spill] sm:$0xff]  ;;  %v873_v39 = vld [vmem:[#allocation2 + $0xf0] sm:$0xff] }
  0x78   : > { %1071 = vst.msk [vmem:[#allocation2 + $0x30] sm:$0xff] %vm811_vm2, %v1041_v1  ;;  %v917_v31 = vadd.f32 %v887_v62, %v853_v8  ;;  %v952_v9 = vmul.f32 %v2247_v13, %v2414_v0  ;;  %v889_v36 = vmul.f32 %v2245_v12, %v2485_v29  ;;  %v1043_v3 = vadd.f32 %v2422_v4, %v979_v55  ;;  %v860_v62 = vld [vmem:[#allocation2 + $0x88] sm:$0xff] }
  0x79   : > { %v980_v56 = vadd.f32 %v950_v38, %v916_v60  ;;  %v918_v10 = vadd.f32 %v888_v34, %v854_v42  ;;  %v953_v37 = vmul.f32 %v2247_v13, %v2428_v6  ;;  %1072 = vst.msk [vmem:[#allocation2 + $0x38] sm:$0xff] %vm811_vm2, %v1042_v32  ;;  %v890_v41 = vmul.f32 %v2245_v12, %v2495_v7  ;;  %v3974_v60 = vld [vmem:[#allocation29_spill] sm:$0xff]  ;;  %v3975_v34 = vld [vmem:[#allocation23_spill] sm:$0xff] }
  0x7a   : > { %v981_v47 = vadd.f32 %v951_v20, %v917_v31  ;;  %v919_v27 = vadd.f32 %v889_v36, %v855_v18  ;;  %v954_v0 = vmul.f32 %v2247_v13, %v2447_v43  ;;  %1073 = vst.msk [vmem:[#allocation2 + $0x40] sm:$0xff] %vm811_vm2, %v1043_v3  ;;  %v891_v6 = vmul.f32 %v2245_v12, %v2544_v44  ;;  %v861_v32 = vld [vmem:[#allocation2 + $0x90] sm:$0xff]  ;;  %v3976_v31 = vld [vmem:[#allocation20_spill] sm:$0xff]  ;;  %v3977_v3 = vld [vmem:[#allocation38_spill] sm:$0xff] }
  0x7b   : > { %v1044_v4 = vadd.f32 %v2434_v17, %v980_v56  ;;  %v982_v28 = vadd.f32 %v952_v9, %v918_v10  ;;  %v955_v5 = vmul.f32 %v2247_v13, %v2504_v24  ;;  %v920_v49 = vadd.f32 %v890_v41, %v856_v22  ;;  %v3978_v10 = vld [vmem:[#allocation30_spill] sm:$0xff] }
  0x7c   : > { %v1045_v11 = vadd.f32 %v2464_v2, %v981_v47  ;;  %v983_v52 = vadd.f32 %v953_v37, %v919_v27  ;;  %v892_v43 = vmul.f32 %v2245_v12, %v2548_v14  ;;  %v921_v58 = vadd.f32 %v891_v6, %v857_v40  ;;  %v3972_v2 = vld [vmem:[#allocation18_spill] sm:$0xff]  ;;  %v3979_v47 = vld [vmem:[#allocation24_spill] sm:$0xff]  ;;  %v3980_v40 = vld [vmem:[#allocation39_spill] sm:$0xff] }
  0x7d   : > { %1074 = vst.msk [vmem:[#allocation2 + $0x48] sm:$0xff] %vm811_vm2, %v1044_v4  ;;  %v1046_v17 = vadd.f32 %v3969_v35, %v982_v28  ;;  %v956_v33 = vmul.f32 %v2247_v13, %v3970_v53  ;;  %v893_v24 = vmul.f32 %v2245_v12, %v3971_v30  ;;  %v984_v8 = vadd.f32 %v954_v0, %v920_v49  ;;  %v862_v22 = vld [vmem:[#allocation2 + $0x98] sm:$0xff]  ;;  %v863_v28 = vld [vmem:[#allocation2 + $0xa0] sm:$0xff]  ;;  %v3983_v49 = vld [vmem:[#allocation44_spill] sm:$0xff] }
  0x7e   : > { %1075 = vst.msk [vmem:[#allocation2 + $0x50] sm:$0xff] %vm811_vm2, %v1045_v11  ;;  %v1047_v23 = vadd.f32 %v3972_v2, %v983_v52  ;;  %v922_v1 = vadd.f32 %v892_v43, %v858_v61  ;;  %v957_v38 = vmul.f32 %v2247_v13, %v3973_v26  ;;  %v985_v42 = vadd.f32 %v955_v5, %v921_v58  ;;  %v3981_v6 = vld [vmem:[#allocation26_spill] sm:$0xff]  ;;  %v3982_v11 = vld [vmem:[#allocation31_spill] sm:$0xff]  ;;  %v3985_v53 = vld [vmem:[#allocation36_spill] sm:$0xff] }
  0x7f   : > { %1076 = vst.msk [vmem:[#allocation2 + $0x58] sm:$0xff] %vm811_vm2, %v1046_v17  ;;  %v923_v55 = vadd.f32 %v893_v24, %v859_v19  ;;  %v894_v20 = vmul.f32 %v2245_v12, %v3974_v60  ;;  %v958_v18 = vmul.f32 %v2247_v13, %v3975_v34  ;;  %v1048_v9 = vadd.f32 %v3976_v31, %v984_v8  ;;  %v3984_v19 = vld [vmem:[#allocation32_spill] sm:$0xff]  ;;  %v3986_v8 = vld [vmem:[#allocation45_spill] sm:$0xff]  ;;  %v3989_v34 = vld [vmem:[#allocation54_spill] sm:$0xff] }
  0x80   : > { %1077 = vst.msk [vmem:[#allocation2 + $0x60] sm:$0xff] %vm811_vm2, %v1047_v23  ;;  %v986_v36 = vadd.f32 %v956_v33, %v922_v1  ;;  %v895_v56 = vmul.f32 %v2245_v12, %v3977_v3  ;;  %v959_v37 = vmul.f32 %v2247_v13, %v3978_v10  ;;  %v1049_v27 = vadd.f32 %v3979_v47, %v985_v42  ;;  %v864_v24 = vld [vmem:[#allocation2 + $0xa8] sm:$0xff]  ;;  %v3987_v26 = vld [vmem:[#allocation37_spill] sm:$0xff]  ;;  %v3988_v42 = vld [vmem:[#allocation34_spill] sm:$0xff] }
  0x81   : > { %v987_v41 = vadd.f32 %v957_v38, %v923_v55  ;;  %v924_v0 = vadd.f32 %v894_v20, %v860_v62  ;;  %v896_v4 = vmul.f32 %v2245_v12, %v3980_v40  ;;  %1078 = vst.msk [vmem:[#allocation2 + $0x68] sm:$0xff] %vm811_vm2, %v1048_v9  ;;  %v960_v52 = vmul.f32 %v2247_v13, %v3982_v11  ;;  %v865_v62 = vld [vmem:[#allocation2 + $0xb0] sm:$0xff]  ;;  %v866_v9 = vld [vmem:[#allocation2 + $0xb8] sm:$0xff]  ;;  %v3996_v11 = vld [vmem:[#allocation48_spill] sm:$0xff] }
  0x82   : > { %v1050_v5 = vadd.f32 %v3981_v6, %v986_v36  ;;  %v925_v61 = vadd.f32 %v895_v56, %v861_v32  ;;  %v897_v43 = vmul.f32 %v2245_v12, %v3983_v49  ;;  %1079 = vst.msk [vmem:[#allocation2 + $0x70] sm:$0xff] %vm811_vm2, %v1049_v27  ;;  %v961_v33 = vmul.f32 %v2247_v13, %v3985_v53  ;;  %v3990_v32 = vld [vmem:[#allocation46_spill] sm:$0xff]  ;;  %v3991_v36 = vld [vmem:[#allocation40_spill] sm:$0xff]  ;;  %v867_v27 = vld [vmem:[#allocation2 + $0xc0] sm:$0xff] }
  0x83   : > { %v1051_v35 = vadd.f32 %v3984_v19, %v987_v41  ;;  %v988_v17 = vadd.f32 %v958_v18, %v924_v0  ;;  %v926_v58 = vadd.f32 %v896_v4, %v862_v22  ;;  %v898_v1 = vmul.f32 %v2245_v12, %v3986_v8  ;;  %v3992_v22 = vld [vmem:[#allocation55_spill] sm:$0xff]  ;;  %v3993_v41 = vld [vmem:[#allocation42_spill] sm:$0xff] }
  0x84   : > { %1080 = vst.msk [vmem:[#allocation2 + $0x78] sm:$0xff] %vm811_vm2, %v1050_v5  ;;  %v989_v2 = vadd.f32 %v959_v37, %v925_v61  ;;  %v927_v23 = vadd.f32 %v897_v43, %v863_v28  ;;  %v962_v38 = vmul.f32 %v2247_v13, %v3987_v26  ;;  %v899_v18 = vmul.f32 %v2245_v12, %v3989_v34  ;;  %v3994_v28 = vld [vmem:[#allocation47_spill] sm:$0xff]  ;;  %v3995_v5 = vld [vmem:[#allocation60_spill] sm:$0xff]  ;;  %v869_v26 = vld [vmem:[#allocation2 + $0xd0] sm:$0xff] }
  0x85   : > { %1081 = vst.msk [vmem:[#allocation2 + $0x80] sm:$0xff] %vm811_vm2, %v1051_v35  ;;  %v1052_v55 = vadd.f32 %v3988_v42, %v988_v17  ;;  %v990_v20 = vadd.f32 %v960_v52, %v926_v58  ;;  %v963_v31 = vmul.f32 %v2247_v13, %v3990_v32  ;;  %v928_v37 = vadd.f32 %v898_v1, %v864_v24  ;;  %v3997_v35 = vld [vmem:[#allocation52_spill] sm:$0xff]  ;;  %v3998_v24 = vld [vmem:[#allocation61_spill] sm:$0xff] }
  0x86   : > { %v1053_v56 = vadd.f32 %v3991_v36, %v989_v2  ;;  %v991_v10 = vadd.f32 %v961_v33, %v927_v23  ;;  %v900_v47 = vmul.f32 %v2245_v12, %v3992_v22  ;;  %v929_v4 = vadd.f32 %v899_v18, %v865_v62  ;;  %v868_v58 = vld [vmem:[#allocation2 + $0xc8] sm:$0xff]  ;;  %v3999_v23 = vld [vmem:[#allocation53_spill] sm:$0xff]  ;;  %v4000_v62 = vld [vmem:[#allocation50_spill] sm:$0xff] }
  0x87   : > { %1082 = vst.msk [vmem:[#allocation2 + $0x88] sm:$0xff] %vm811_vm2, %v1052_v55  ;;  %v1054_v0 = vadd.f32 %v3993_v41, %v990_v20  ;;  %v964_v6 = vmul.f32 %v2247_v13, %v3994_v28  ;;  %v901_v61 = vmul.f32 %v2245_v12, %v3995_v5  ;;  %v992_v43 = vadd.f32 %v962_v38, %v928_v37  ;;  %v4001_v55 = vld [vmem:[#allocation70_spill] sm:$0xff]  ;;  %v4003_v36 = vld [vmem:[#allocation56_spill] sm:$0xff]  ;;  %v871_v41 = vld [vmem:[#allocation2 + $0xe0] sm:$0xff] }
  0x88   : > { %1083 = vst.msk [vmem:[#allocation2 + $0x90] sm:$0xff] %vm811_vm2, %v1053_v56  ;;  %v1055_v52 = vadd.f32 %v3996_v11, %v991_v10  ;;  %v930_v19 = vadd.f32 %v900_v47, %v866_v9  ;;  %v965_v17 = vmul.f32 %v2247_v13, %v3997_v35  ;;  %v993_v53 = vadd.f32 %v963_v31, %v929_v4  ;;  %v4002_v18 = vld [vmem:[#allocation62_spill] sm:$0xff]  ;;  %v4004_v47 = vld [vmem:[#allocation71_spill] sm:$0xff] }
  0x89   : > { %1084 = vst.msk [vmem:[#allocation2 + $0x98] sm:$0xff] %vm811_vm2, %v1054_v0  ;;  %v931_v33 = vadd.f32 %v901_v61, %v867_v27  ;;  %v902_v2 = vmul.f32 %v2245_v12, %v3998_v24  ;;  %v966_v1 = vmul.f32 %v2247_v13, %v3999_v23  ;;  %v1056_v38 = vadd.f32 %v4000_v62, %v992_v43  ;;  %v870_v31 = vld [vmem:[#allocation2 + $0xd8] sm:$0xff]  ;;  %v4006_v61 = vld [vmem:[#allocation63_spill] sm:$0xff]  ;;  %v872_v62 = vld [vmem:[#allocation2 + $0xe8] sm:$0xff] }
  0x8a   : > { %1085 = vst.msk [vmem:[#allocation2 + $0xa0] sm:$0xff] %vm811_vm2, %v1055_v52  ;;  %v994_v42 = vadd.f32 %v964_v6, %v930_v19  ;;  %v903_v20 = vmul.f32 %v2245_v12, %v4001_v55  ;;  %v967_v9 = vmul.f32 %v2247_v13, %v4002_v18  ;;  %v1057_v56 = vadd.f32 %v4003_v36, %v993_v53  ;;  %v4005_v0 = vld [vmem:[#allocation58_spill] sm:$0xff]  ;;  %v4007_v52 = vld [vmem:[#allocation76_spill] sm:$0xff]  ;;  %v4011_v36 = vld [vmem:[#allocation69_spill] sm:$0xff] }
  0x8b   : > { %v995_v10 = vadd.f32 %v965_v17, %v931_v33  ;;  %v932_v37 = vadd.f32 %v902_v2, %v868_v58  ;;  %v904_v27 = vmul.f32 %v2245_v12, %v4004_v47  ;;  %1086 = vst.msk [vmem:[#allocation2 + $0xa8] sm:$0xff] %vm811_vm2, %v1056_v38  ;;  %v968_v11 = vmul.f32 %v2247_v13, %v4006_v61  ;;  %v4008_v19 = vld [vmem:[#allocation64_spill] sm:$0xff] }
  0x8c   : > { %v1058_v4 = vadd.f32 %v4005_v0, %v994_v42  ;;  %v933_v6 = vadd.f32 %v903_v20, %v869_v26  ;;  %v905_v43 = vmul.f32 %v2245_v12, %v4007_v52  ;;  %1087 = vst.msk [vmem:[#allocation2 + $0xb0] sm:$0xff] %vm811_vm2, %v1057_v56  ;;  %v4009_v33 = vld [vmem:[#allocation68_spill] sm:$0xff]  ;;  %v4010_v42 = vld [vmem:[#allocation77_spill] sm:$0xff]  ;;  %v970_v0 = vmul.f32 %v2247_v13, %v4011_v36  ;;  %v4012_v56 = vld [vmem:[#allocation66_spill] sm:$0xff] }
  0x8d   : > { %v1059_v17 = vadd.f32 %v4008_v19, %v995_v10  ;;  %v996_v58 = vadd.f32 %v966_v1, %v932_v37  ;;  %v934_v53 = vadd.f32 %v904_v27, %v870_v31  ;;  %v969_v2 = vmul.f32 %v2247_v13, %v4009_v33  ;;  %v4013_v10 = vld [vmem:[#allocation86_spill] sm:$0xff] }
  0x8e   : > { %1088 = vst.msk [vmem:[#allocation2 + $0xb8] sm:$0xff] %vm811_vm2, %v1058_v4  ;;  %v997_v38 = vadd.f32 %v967_v9, %v933_v6  ;;  %v935_v26 = vadd.f32 %v905_v43, %v871_v41  ;;  %v906_v20 = vmul.f32 %v2245_v12, %v4010_v42  ;;  %v907_v37 = vmul.f32 %v2245_v12, %v4013_v10  ;;  %v4014_v27 = vld [vmem:[#allocation78_spill] sm:$0xff]  ;;  %v4015_v41 = vld [vmem:[#allocation72_spill] sm:$0xff] }
  0x8f   : > { %1089 = vst.msk [vmem:[#allocation2 + $0xc0] sm:$0xff] %vm811_vm2, %v1059_v17  ;;  %v1060_v1 = vadd.f32 %v4012_v56, %v996_v58  ;;  %v998_v31 = vadd.f32 %v968_v11, %v934_v53  ;;  %v971_v4 = vmul.f32 %v2247_v13, %v4014_v27  ;;  %v874_v9 = vld [vmem:[#allocation2 + $0xf8] sm:$0xff]  ;;  %v908_v63 = vmul.f32 %v2245_v12, %v4016_v54  ;;  %v4018_v53 = vld [vmem:[#allocation79_spill] sm:$0xff] }
  0x90   : > { %v1061_v6 = vadd.f32 %v4015_v41, %v997_v38  ;;  %v999_v43 = vadd.f32 %v969_v2, %v935_v26  ;;  %v936_v19 = vadd.f32 %v906_v20, %v872_v62  ;;  %v4017_v17 = vld [vmem:[#allocation74_spill] sm:$0xff]  ;;  %v937_v58 = vadd.f32 %v907_v37, %v873_v39  ;;  %v4020_v2 = vld [vmem:[#allocation80_spill] sm:$0xff]  ;;  %v3152_v20 = vld [vmem:[%s2227_s29 + $0x10] sm:$0xff] }
  0x91   : > { %1090 = vst.msk [vmem:[#allocation2 + $0xc8] sm:$0xff] %vm811_vm2, %v1060_v1  ;;  %v1062_v11 = vadd.f32 %v4017_v17, %v998_v31  ;;  %v972_v56 = vmul.f32 %v2247_v13, %v4018_v53  ;;  %v1131_v27 = vmul.f32 %v4019_v25, %v2305_v45  ;;  %v938_v26 = vadd.f32 %v908_v63, %v874_v9  ;;  %v4022_v1 = vld [vmem:[#allocation6_spill] sm:$0xff]  ;;  %v1098_v31 = vld [vmem:[#allocation2 + $0x8] sm:$0xff] }
  0x92   : > { %1091 = vst.msk [vmem:[#allocation2 + $0xd0] sm:$0xff] %vm811_vm2, %v1061_v6  ;;  %v1063_v62 = vadd.f32 %v4020_v2, %v999_v43  ;;  %v1000_v38 = vadd.f32 %v970_v0, %v936_v19  ;;  %4021 = vst [vmem:[#allocation15_spill] sm:$0xff] %v3152_v20  ;;  %v1195_v41 = vmul.f32 %v3152_v20, %v4022_v1  ;;  %v3160_v17 = vld [vmem:[%s2227_s29 + $0x18] sm:$0xff]  ;;  %v1099_v6 = vld [vmem:[#allocation2 + $0x10] sm:$0xff] }
  0x93   : > { %1092 = vst.msk [vmem:[#allocation2 + $0xd8] sm:$0xff] %vm811_vm2, %v1062_v11  ;;  %v1001_v39 = vadd.f32 %v971_v4, %v937_v58  ;;  %v1161_v37 = vadd.f32 %v1131_v27, %v1097_v21  ;;  %v1132_v45 = vmul.f32 %v4019_v25, %v2309_v46  ;;  %v1196_v0 = vmul.f32 %v3160_v17, %v4022_v1  ;;  %v4023_v63 = vld [vmem:[#allocation82_spill] sm:$0xff]  ;;  %v3169_v4 = vld [vmem:[%s2227_s29 + $0x20] sm:$0xff]  ;;  %v4024_v27 = vld [vmem:[#allocation88_spill] sm:$0xff] }
  0x94   : > { %1093 = vst.msk [vmem:[#allocation2 + $0xe0] sm:$0xff] %vm811_vm2, %v1063_v62  ;;  %v1064_v9 = vadd.f32 %v4023_v63, %v1000_v38  ;;  %v1002_v43 = vadd.f32 %v972_v56, %v938_v26  ;;  %v1133_v19 = vmul.f32 %v4019_v25, %v2356_v15  ;;  %v1197_v46 = vmul.f32 %v3169_v4, %v4022_v1  ;;  %v1100_v21 = vld [vmem:[#allocation2 + $0x18] sm:$0xff]  ;;  %v1101_v20 = vld [vmem:[#allocation2 + $0x20] sm:$0xff]  ;;  %v3179_v38 = vld [vmem:[%s2227_s29 + $0x28] sm:$0xff] }
  0x95   : > { %v1065_v11 = vadd.f32 %v4024_v27, %v1001_v39  ;;  %v1225_v58 = vadd.f32 %v1195_v41, %v1161_v37  ;;  %v1162_v2 = vadd.f32 %v1132_v45, %v1098_v31  ;;  %v1134_v62 = vmul.f32 %v4019_v25, %v2360_v16  ;;  %v4025_v41 = vld [vmem:[#allocation8_spill] sm:$0xff]  ;;  %v3188_v45 = vld [vmem:[%s2227_s29 + $0x30] sm:$0xff] }
  0x96   : > { %1094 = vst.msk [vmem:[#allocation2 + $0xe8] sm:$0xff] %vm811_vm2, %v1064_v9  ;;  %v1066_v56 = vadd.f32 %v2938_v51, %v1002_v43  ;;  %v1163_v15 = vadd.f32 %v1133_v19, %v1099_v6  ;;  %v1198_v26 = vmul.f32 %v3179_v38, %v4022_v1  ;;  %v1135_v39 = vmul.f32 %v4019_v25, %v2403_v57  ;;  %v1102_v6 = vld [vmem:[#allocation2 + $0x28] sm:$0xff]  ;;  %v3196_v43 = vld [vmem:[%s2227_s29 + $0x38] sm:$0xff]  ;;  %v1103_v19 = vld [vmem:[#allocation2 + $0x30] sm:$0xff] }
  0x97   : > { %1095 = vst.msk [vmem:[#allocation2 + $0xf0] sm:$0xff] %vm811_vm2, %v1065_v11  ;;  %v1289_v31 = vadd.f32 %v4025_v41, %v1225_v58  ;;  %v1226_v16 = vadd.f32 %v1196_v0, %v1162_v2  ;;  %v1164_v37 = vadd.f32 %v1134_v62, %v1100_v21  ;;  %v1199_v51 = vmul.f32 %v3188_v45, %v4022_v1  ;;  %v4026_v21 = vld [vmem:[#allocation9_spill] sm:$0xff]  ;;  %v4027_v2 = vld [vmem:[#allocation10_spill] sm:$0xff]  ;;  %v1105_v41 = vld [vmem:[#allocation2 + $0x40] sm:$0xff] }
  0x98   : > { %1096 = vst.msk [vmem:[#allocation2 + $0xf8] sm:$0xff] %vm811_vm2, %v1066_v56  ;;  %v1227_v63 = vadd.f32 %v1197_v46, %v1163_v15  ;;  %v1165_v9 = vadd.f32 %v1135_v39, %v1101_v20  ;;  %v1136_v57 = vmul.f32 %v4019_v25, %v2409_v59  ;;  %v1200_v0 = vmul.f32 %v3196_v43, %v4022_v1  ;;  %v3205_v46 = vld [vmem:[%s2227_s29 + $0x40] sm:$0xff]  ;;  %v1104_v20 = vld [vmem:[#allocation2 + $0x38] sm:$0xff] }
  0x99   : > { %1319 = vst.msk [vmem:[#allocation2] sm:$0xff] %vm811_vm2, %v1289_v31  ;;  %v1290_v27 = vadd.f32 %v4026_v21, %v1226_v16  ;;  %v1228_v11 = vadd.f32 %v1198_v26, %v1164_v37  ;;  %v1137_v58 = vmul.f32 %v4019_v25, %v2452_v48  ;;  %v1201_v59 = vmul.f32 %v3205_v46, %v4022_v1  ;;  %v4028_v26 = vld [vmem:[#allocation11_spill] sm:$0xff]  ;;  %v3215_v16 = vld [vmem:[%s2227_s29 + $0x48] sm:$0xff] }
  0x9a   : > { %v1291_v62 = vadd.f32 %v4027_v2, %v1227_v63  ;;  %v1229_v56 = vadd.f32 %v1199_v51, %v1165_v9  ;;  %v1166_v15 = vadd.f32 %v1136_v57, %v1102_v6  ;;  %v1138_v39 = vmul.f32 %v4019_v25, %v2458_v50  ;;  %v4029_v51 = vld [vmem:[#allocation12_spill] sm:$0xff]  ;;  %v3224_v57 = vld [vmem:[%s2227_s29 + $0x50] sm:$0xff] }
  0x9b   : > { %1320 = vst.msk [vmem:[#allocation2 + $0x8] sm:$0xff] %vm811_vm2, %v1290_v27  ;;  %v1292_v31 = vadd.f32 %v4028_v26, %v1228_v11  ;;  %v1167_v48 = vadd.f32 %v1137_v58, %v1103_v19  ;;  %v1202_v37 = vmul.f32 %v3215_v16, %v4022_v1  ;;  %v1139_v63 = vmul.f32 %v4019_v25, %v2485_v29  ;;  %v1106_v21 = vld [vmem:[#allocation2 + $0x48] sm:$0xff]  ;;  %v3232_v58 = vld [vmem:[%s2227_s29 + $0x58] sm:$0xff]  ;;  %v1107_v2 = vld [vmem:[#allocation2 + $0x50] sm:$0xff] }
  0x9c   : > { %1321 = vst.msk [vmem:[#allocation2 + $0x10] sm:$0xff] %vm811_vm2, %v1291_v62  ;;  %v1293_v6 = vadd.f32 %v4029_v51, %v1229_v56  ;;  %v1230_v50 = vadd.f32 %v1200_v0, %v1166_v15  ;;  %v1168_v9 = vadd.f32 %v1138_v39, %v1104_v20  ;;  %v1203_v19 = vmul.f32 %v3224_v57, %v4022_v1  ;;  %v4030_v20 = vld [vmem:[#allocation13_spill] sm:$0xff]  ;;  %v1108_v39 = vld [vmem:[#allocation2 + $0x58] sm:$0xff]  ;;  %v1109_v51 = vld [vmem:[#allocation2 + $0x60] sm:$0xff] }
  0x9d   : > { %1322 = vst.msk [vmem:[#allocation2 + $0x18] sm:$0xff] %vm811_vm2, %v1292_v31  ;;  %v1231_v27 = vadd.f32 %v1201_v59, %v1167_v48  ;;  %v1169_v11 = vadd.f32 %v1139_v63, %v1105_v41  ;;  %v1140_v29 = vmul.f32 %v4019_v25, %v2495_v7  ;;  %v1204_v0 = vmul.f32 %v3232_v58, %v4022_v1  ;;  %v3241_v59 = vld [vmem:[%s2227_s29 + $0x60] sm:$0xff]  ;;  %v4031_v41 = vld [vmem:[#allocation14_spill] sm:$0xff] }
  0x9e   : > { %1323 = vst.msk [vmem:[#allocation2 + $0x20] sm:$0xff] %vm811_vm2, %v1293_v6  ;;  %v1294_v62 = vadd.f32 %v4030_v20, %v1230_v50  ;;  %v1232_v56 = vadd.f32 %v1202_v37, %v1168_v9  ;;  %v1141_v15 = vmul.f32 %v4019_v25, %v2544_v44  ;;  %v1205_v7 = vmul.f32 %v3241_v59, %v4022_v1  ;;  %v4032_v37 = vld [vmem:[#allocation16_spill] sm:$0xff] }
  0x9f   : > { %v1295_v26 = vadd.f32 %v4031_v41, %v1231_v27  ;;  %v1233_v31 = vadd.f32 %v1203_v19, %v1169_v11  ;;  %v1170_v48 = vadd.f32 %v1140_v29, %v1106_v21  ;;  %v1142_v63 = vmul.f32 %v4019_v25, %v2548_v14  ;;  %v3251_v50 = vld [vmem:[%s2227_s29 + $0x68] sm:$0xff]  ;;  %v4033_v19 = vld [vmem:[#allocation19_spill] sm:$0xff]  ;;  %v3260_v29 = vld [vmem:[%s2227_s29 + $0x70] sm:$0xff] }
  0xa0   : > { %1324 = vst.msk [vmem:[#allocation2 + $0x28] sm:$0xff] %vm811_vm2, %v1294_v62  ;;  %v1296_v6 = vadd.f32 %v4032_v37, %v1232_v56  ;;  %v1171_v44 = vadd.f32 %v1141_v15, %v1107_v2  ;;  %v1206_v9 = vmul.f32 %v3251_v50, %v4022_v1  ;;  %v1143_v27 = vmul.f32 %v4019_v25, %v3971_v30  ;;  %v1110_v20 = vld [vmem:[#allocation2 + $0x68] sm:$0xff]  ;;  %v3268_v15 = vld [vmem:[%s2227_s29 + $0x78] sm:$0xff]  ;;  %v1111_v41 = vld [vmem:[#allocation2 + $0x70] sm:$0xff] }
  0xa1   : > { %1325 = vst.msk [vmem:[#allocation2 + $0x30] sm:$0xff] %vm811_vm2, %v1295_v26  ;;  %v1297_v21 = vadd.f32 %v4033_v19, %v1233_v31  ;;  %v1234_v14 = vadd.f32 %v1204_v0, %v1170_v48  ;;  %v1172_v11 = vadd.f32 %v1142_v63, %v1108_v39  ;;  %v1207_v2 = vmul.f32 %v3260_v29, %v4022_v1  ;;  %v4034_v39 = vld [vmem:[#allocation21_spill] sm:$0xff]  ;;  %v1112_v63 = vld [vmem:[#allocation2 + $0x78] sm:$0xff]  ;;  %v1113_v19 = vld [vmem:[#allocation2 + $0x80] sm:$0xff] }
  0xa2   : > { %1326 = vst.msk [vmem:[#allocation2 + $0x38] sm:$0xff] %vm811_vm2, %v1296_v6  ;;  %v1235_v62 = vadd.f32 %v1205_v7, %v1171_v44  ;;  %v1173_v56 = vadd.f32 %v1143_v27, %v1109_v51  ;;  %v1144_v30 = vmul.f32 %v4019_v25, %v3974_v60  ;;  %v1208_v0 = vmul.f32 %v3268_v15, %v4022_v1  ;;  %v3277_v7 = vld [vmem:[%s2227_s29 + $0x80] sm:$0xff]  ;;  %v4035_v51 = vld [vmem:[#allocation25_spill] sm:$0xff] }
  0xa3   : > { %1327 = vst.msk [vmem:[#allocation2 + $0x40] sm:$0xff] %vm811_vm2, %v1297_v21  ;;  %v1298_v26 = vadd.f32 %v4034_v39, %v1234_v14  ;;  %v1236_v31 = vadd.f32 %v1206_v9, %v1172_v11  ;;  %v1145_v48 = vmul.f32 %v4019_v25, %v3977_v3  ;;  %v1209_v60 = vmul.f32 %v3277_v7, %v4022_v1  ;;  %v4036_v9 = vld [vmem:[#allocation27_spill] sm:$0xff]  ;;  %v3287_v14 = vld [vmem:[%s2227_s29 + $0x88] sm:$0xff] }
  0xa4   : > { %v1299_v37 = vadd.f32 %v4035_v51, %v1235_v62  ;;  %v1237_v6 = vadd.f32 %v1207_v2, %v1173_v56  ;;  %v1174_v44 = vadd.f32 %v1144_v30, %v1110_v20  ;;  %v1146_v27 = vmul.f32 %v4019_v25, %v3980_v40  ;;  %v4037_v2 = vld [vmem:[#allocation33_spill] sm:$0xff] }
  0xa5   : > { %1328 = vst.msk [vmem:[#allocation2 + $0x48] sm:$0xff] %vm811_vm2, %v1298_v26  ;;  %v1300_v21 = vadd.f32 %v4036_v9, %v1236_v31  ;;  %v1175_v3 = vadd.f32 %v1145_v48, %v1111_v41  ;;  %v1210_v11 = vmul.f32 %v3287_v14, %v4022_v1  ;;  %v1147_v62 = vmul.f32 %v4019_v25, %v3983_v49  ;;  %v3296_v30 = vld [vmem:[%s2227_s29 + $0x90] sm:$0xff]  ;;  %v1114_v41 = vld [vmem:[#allocation2 + $0x88] sm:$0xff]  ;;  %v3304_v49 = vld [vmem:[%s2227_s29 + $0x98] sm:$0xff] }
  0xa6   : > { %1329 = vst.msk [vmem:[#allocation2 + $0x50] sm:$0xff] %vm811_vm2, %v1299_v37  ;;  %v1301_v20 = vadd.f32 %v4037_v2, %v1237_v6  ;;  %v1238_v40 = vadd.f32 %v1208_v0, %v1174_v44  ;;  %v1176_v56 = vadd.f32 %v1146_v27, %v1112_v63  ;;  %v1211_v39 = vmul.f32 %v3296_v30, %v4022_v1  ;;  %v1115_v0 = vld [vmem:[#allocation2 + $0x90] sm:$0xff]  ;;  %v4038_v63 = vld [vmem:[#allocation35_spill] sm:$0xff]  ;;  %v1116_v27 = vld [vmem:[#allocation2 + $0x98] sm:$0xff] }
  0xa7   : > { %1330 = vst.msk [vmem:[#allocation2 + $0x58] sm:$0xff] %vm811_vm2, %v1300_v21  ;;  %v1239_v26 = vadd.f32 %v1209_v60, %v1175_v3  ;;  %v1177_v31 = vadd.f32 %v1147_v62, %v1113_v19  ;;  %v1148_v48 = vmul.f32 %v4019_v25, %v3986_v8  ;;  %v1212_v51 = vmul.f32 %v3304_v49, %v4022_v1  ;;  %v4039_v19 = vld [vmem:[#allocation41_spill] sm:$0xff]  ;;  %v1117_v62 = vld [vmem:[#allocation2 + $0xa0] sm:$0xff] }
  0xa8   : > { %1331 = vst.msk [vmem:[#allocation2 + $0x60] sm:$0xff] %vm811_vm2, %v1301_v20  ;;  %v1302_v37 = vadd.f32 %v4038_v63, %v1238_v40  ;;  %v1240_v6 = vadd.f32 %v1210_v11, %v1176_v56  ;;  %v1149_v44 = vmul.f32 %v4019_v25, %v3989_v34  ;;  %v1213_v60 = vmul.f32 %v4022_v1, %v3990_v32  ;;  %v4040_v2 = vld [vmem:[#allocation43_spill] sm:$0xff]  ;;  %v4041_v40 = vld [vmem:[#allocation49_spill] sm:$0xff] }
  0xa9   : > { %v1303_v8 = vadd.f32 %v4039_v19, %v1239_v26  ;;  %v1241_v9 = vadd.f32 %v1211_v39, %v1177_v31  ;;  %v1178_v21 = vadd.f32 %v1148_v48, %v1114_v41  ;;  %v1150_v3 = vmul.f32 %v4019_v25, %v3992_v22  ;;  %v1118_v26 = vld [vmem:[#allocation2 + $0xa8] sm:$0xff]  ;;  %v4042_v63 = vld [vmem:[#allocation51_spill] sm:$0xff] }
  0xaa   : > { %1332 = vst.msk [vmem:[#allocation2 + $0x68] sm:$0xff] %vm811_vm2, %v1302_v37  ;;  %v1304_v20 = vadd.f32 %v4040_v2, %v1240_v6  ;;  %v1179_v11 = vadd.f32 %v1149_v44, %v1115_v0  ;;  %v1214_v34 = vmul.f32 %v4022_v1, %v3994_v28  ;;  %v1151_v32 = vmul.f32 %v4019_v25, %v3995_v5  ;;  %v1119_v0 = vld [vmem:[#allocation2 + $0xb0] sm:$0xff]  ;;  %v1120_v44 = vld [vmem:[#allocation2 + $0xb8] sm:$0xff] }
  0xab   : > { %1333 = vst.msk [vmem:[#allocation2 + $0x70] sm:$0xff] %vm811_vm2, %v1303_v8  ;;  %v1305_v56 = vadd.f32 %v4041_v40, %v1241_v9  ;;  %v1242_v39 = vadd.f32 %v1212_v51, %v1178_v21  ;;  %v1180_v41 = vadd.f32 %v1150_v3, %v1116_v27  ;;  %v1215_v22 = vmul.f32 %v4022_v1, %v3997_v35  ;;  %v1121_v8 = vld [vmem:[#allocation2 + $0xc0] sm:$0xff] }
  0xac   : > { %1334 = vst.msk [vmem:[#allocation2 + $0x78] sm:$0xff] %vm811_vm2, %v1304_v20  ;;  %v1243_v31 = vadd.f32 %v1213_v60, %v1179_v11  ;;  %v1181_v48 = vadd.f32 %v1151_v32, %v1117_v62  ;;  %v1152_v28 = vmul.f32 %v4019_v25, %v3998_v24  ;;  %v1216_v5 = vmul.f32 %v4022_v1, %v3999_v23  ;;  %v4043_v60 = vld [vmem:[#allocation57_spill] sm:$0xff]  ;;  %v4044_v9 = vld [vmem:[#allocation59_spill] sm:$0xff] }
  0xad   : > { %1335 = vst.msk [vmem:[#allocation2 + $0x80] sm:$0xff] %vm811_vm2, %v1305_v56  ;;  %v1306_v51 = vadd.f32 %v4042_v63, %v1242_v39  ;;  %v1244_v37 = vadd.f32 %v1214_v34, %v1180_v41  ;;  %v1153_v35 = vmul.f32 %v4019_v25, %v4001_v55  ;;  %v1217_v6 = vmul.f32 %v4022_v1, %v4002_v18  ;;  %v4045_v62 = vld [vmem:[#allocation65_spill] sm:$0xff]  ;;  %v1122_v34 = vld [vmem:[#allocation2 + $0xc8] sm:$0xff]  ;;  %v4046_v39 = vld [vmem:[#allocation67_spill] sm:$0xff] }
  0xae   : > { %v1307_v27 = vadd.f32 %v4043_v60, %v1243_v31  ;;  %v1245_v24 = vadd.f32 %v1215_v22, %v1181_v48  ;;  %v1182_v19 = vadd.f32 %v1152_v28, %v1118_v26  ;;  %v1154_v23 = vmul.f32 %v4019_v25, %v4004_v47  ;;  %v1123_v56 = vld [vmem:[#allocation2 + $0xd0] sm:$0xff]  ;;  %v4047_v26 = vld [vmem:[#allocation78_spill] sm:$0xff]  ;;  %v1125_v63 = vld [vmem:[#allocation2 + $0xe0] sm:$0xff] }
  0xaf   : > { %1336 = vst.msk [vmem:[#allocation2 + $0x88] sm:$0xff] %vm811_vm2, %v1306_v51  ;;  %v1308_v21 = vadd.f32 %v4044_v9, %v1244_v37  ;;  %v1183_v3 = vadd.f32 %v1153_v35, %v1119_v0  ;;  %v1218_v55 = vmul.f32 %v4022_v1, %v4006_v61  ;;  %v1155_v18 = vmul.f32 %v4019_v25, %v4007_v52  ;;  %v1349_v60 = vld [vmem:[%s426_s10] sm:$0xff] }
  0xb0   : > { %1337 = vst.msk [vmem:[#allocation2 + $0x90] sm:$0xff] %vm811_vm2, %v1307_v27  ;;  %v1309_v2 = vadd.f32 %v4045_v62, %v1245_v24  ;;  %v1246_v20 = vadd.f32 %v1216_v5, %v1182_v19  ;;  %v1184_v47 = vadd.f32 %v1154_v23, %v1120_v44  ;;  %v1219_v11 = vmul.f32 %v4022_v1, %v4009_v33  ;;  %v1350_v27 = vld [vmem:[%s426_s10 + $0x8] sm:$0xff]  ;;  %v4051_v24 = vld [vmem:[#allocation81_spill] sm:$0xff] }
  0xb1   : > { %1338 = vst.msk [vmem:[#allocation2 + $0x98] sm:$0xff] %vm811_vm2, %v1308_v21  ;;  %v1247_v32 = vadd.f32 %v1217_v6, %v1183_v3  ;;  %v1185_v40 = vadd.f32 %v1155_v18, %v1121_v8  ;;  %v1156_v61 = vmul.f32 %v4019_v25, %v4010_v42  ;;  %v1220_v52 = vmul.f32 %v4022_v1, %v4011_v36  ;;  %v1124_v42 = vld [vmem:[#allocation2 + $0xd8] sm:$0xff]  ;;  %v4048_v36 = vld [vmem:[#allocation73_spill] sm:$0xff]  ;;  %v4050_v6 = vld [vmem:[#allocation91_spill] sm:$0xff] }
  0xb2   : > { %1339 = vst.msk [vmem:[#allocation2 + $0xa0] sm:$0xff] %vm811_vm2, %v1309_v2  ;;  %v1310_v33 = vadd.f32 %v4046_v39, %v1246_v20  ;;  %v1248_v41 = vadd.f32 %v1218_v55, %v1184_v47  ;;  %v1157_v22 = vmul.f32 %v4019_v25, %v4013_v10  ;;  %v1221_v31 = vmul.f32 %v4022_v1, %v4047_v26  ;;  %v4049_v10 = vld [vmem:[#allocation75_spill] sm:$0xff]  ;;  %v4052_v8 = vld [vmem:[#allocation84_spill] sm:$0xff]  ;;  %v4054_v2 = vld [vmem:[#allocation85_spill] sm:$0xff] }
  0xb3   : > { %v1311_v48 = vadd.f32 %v4048_v36, %v1247_v32  ;;  %v1249_v28 = vadd.f32 %v1219_v11, %v1185_v40  ;;  %v1186_v5 = vadd.f32 %v1156_v61, %v1122_v34  ;;  %v1158_v0 = vmul.f32 %v4019_v25, %v4016_v54  ;;  %v1126_v21 = vld [vmem:[#allocation2 + $0xe8] sm:$0xff]  ;;  %v1357_v3 = vld [vmem:[%s3370_s13] sm:$0xff]  ;;  %v4056_v61 = vld [vmem:[#allocation89_spill] sm:$0xff] }
  0xb4   : > { %1340 = vst.msk [vmem:[#allocation2 + $0xa8] sm:$0xff] %vm811_vm2, %v1310_v33  ;;  %v1312_v51 = vadd.f32 %v4049_v10, %v1248_v41  ;;  %v1187_v37 = vadd.f32 %v1157_v22, %v1123_v56  ;;  %v1222_v35 = vmul.f32 %v4022_v1, %v4018_v53  ;;  %v1159_v44 = vmul.f32 %v4019_v25, %v4050_v6  ;;  %v4053_v18 = vld [vmem:[#allocation92_spill] sm:$0xff]  ;;  %v4055_v47 = vld [vmem:[#allocation83_spill] sm:$0xff]  ;;  %v4057_v22 = vld [vmem:[#allocation90_spill] sm:$0xff] }
  0xb5   : > { %1341 = vst.msk [vmem:[#allocation2 + $0xb0] sm:$0xff] %vm811_vm2, %v1311_v48  ;;  %v1313_v19 = vadd.f32 %v4051_v24, %v1249_v28  ;;  %v1250_v23 = vadd.f32 %v1220_v52, %v1186_v5  ;;  %v1188_v54 = vadd.f32 %v1158_v0, %v1124_v42  ;;  %v1223_v9 = vmul.f32 %v4022_v1, %v4052_v8  ;;  %v1358_v33 = vld [vmem:[%s3370_s13 + $0x8] sm:$0xff]  ;;  %v4058_v48 = vld [vmem:[#allocation93_spill] sm:$0xff] }
  0xb6   : > { %1342 = vst.msk [vmem:[#allocation2 + $0xb8] sm:$0xff] %vm811_vm2, %v1312_v51  ;;  %v1251_v53 = vadd.f32 %v1221_v31, %v1187_v37  ;;  %v1189_v55 = vadd.f32 %v1159_v44, %v1125_v63  ;;  %v1160_v62 = vmul.f32 %v4019_v25, %v4053_v18  ;;  %v1224_v20 = vmul.f32 %v4022_v1, %v4054_v2  ;;  %v1381_v37 = vld [vmem:[#allocation2] sm:$0xff]  ;;  %v4061_v8 = vld [vmem:[#allocation4_spill] sm:$0xff] }
  0xb7   : > { %1343 = vst.msk [vmem:[#allocation2 + $0xc0] sm:$0xff] %vm811_vm2, %v1313_v19  ;;  %v1314_v11 = vadd.f32 %v4055_v47, %v1250_v23  ;;  %v1252_v34 = vadd.f32 %v1222_v35, %v1188_v54  ;;  %v3393_v32 = vmul.f32 0.0, %v1349_v60  ;;  %v1356_v40 = vmul.f32 0.0, %v1350_v27  ;;  %v4060_v60 = vld [vmem:[#allocation94_spill] sm:$0xff]  ;;  %v1382_v54 = vld [vmem:[#allocation2 + $0x8] sm:$0xff] }
  0xb8   : > { %v1315_v52 = vadd.f32 %v4056_v61, %v1251_v53  ;;  %v1253_v56 = vadd.f32 %v1223_v9, %v1189_v55  ;;  %v1190_v39 = vadd.f32 %v1160_v62, %v1126_v21  ;;  %v3397_v41 = vmul.f32 0.0, %v1357_v3  ;;  %v3437_v47 = vld [vmem:[%s3801_s3] sm:$0x7]  ;;  %v3466_v10 = vld [vmem:[%s3801_s3 + $0x8] sm:$0x7] }
  0xb9   : > { %1344 = vst.msk [vmem:[#allocation2 + $0xc8] sm:$0xff] %vm811_vm2, %v1314_v11  ;;  %v1316_v26 = vadd.f32 %v4057_v22, %v1252_v34  ;;  %v1365_v31 = vrot.slane %v3393_v32, 7  ;;  %v1366_v42 = vrot.slane %v1356_v40, 7  ;;  %v1369_v36 = vrot.slane %v3393_v32, 1  ;;  %v4062_v22 = vld [vmem:[#allocation7_spill] sm:$0xff] }
  0xba   : > { %1345 = vst.msk [vmem:[#allocation2 + $0xd0] sm:$0xff] %vm811_vm2, %v1315_v52  ;;  %v1317_v28 = vadd.f32 %v4058_v48, %v1253_v56  ;;  %v1254_v5 = vadd.f32 %v1224_v20, %v1190_v39  ;;  %v1370_v0 = vrot.slane %v1356_v40, 1  ;;  %v1387_v63 = vmul.f32 %v3393_v32, %v2247_v13  ;;  %v1398_v56 = vld [vmem:[#allocation2 + $0xf0] sm:$0xff] }
  0xbb   : > { %1346 = vst.msk [vmem:[#allocation2 + $0xd8] sm:$0xff] %vm811_vm2, %v1316_v26  ;;  %v1368_v51 = vsel %vm541_vm0, %v1366_v42, %v1365_v31  ;;  %v1367_v35 = vsel %vm541_vm0, %v1365_v31, %v1366_v42  ;;  %v1388_v6 = vmul.f32 %v1356_v40, %v2247_v13  ;;  %v3413_v44 = vmul.f32 0.0, %v1358_v33  ;;  %v1399_v42 = vld [vmem:[#allocation2 + $0xf8] sm:$0xff] }
  0xbc   : > { %1347 = vst.msk [vmem:[#allocation2 + $0xe0] sm:$0xff] %vm811_vm2, %v1317_v28  ;;  %v1318_v27 = vadd.f32 %v4060_v60, %v1254_v5  ;;  %v1371_v24 = vsel %vm606_vm1, %v1369_v36, %v1370_v0  ;;  %v1383_v19 = vmul.f32 %v1368_v51, %v2245_v12  ;;  %v1372_v23 = vsel %vm606_vm1, %v1370_v0, %v1369_v36  ;;  %v3458_v51 = vld [vmem:[%s3801_s3 + $0x4] sm:$0x7] }
  0xbd   : > { %v1391_v9 = vmul.f32 %v1371_v24, %v4061_v8  ;;  %v1384_v21 = vmul.f32 %v1367_v35, %v2245_v12  ;;  %v1392_v13 = vmul.f32 %v1372_v23, %v4061_v8  ;;  %v1373_v3 = vrot.slane %v3397_v41, 7  ;;  %v2125_v35 = vld [vmem:[%s2227_s29 + $0x8] sm:$0xff] }
  0xbe   : > { %1348 = vst.msk [vmem:[#allocation2 + $0xe8] sm:$0xff] %vm811_vm2, %v1318_v27  ;;  %v1385_v53 = vadd.f32 %v1383_v19, %v1381_v37  ;;  %v1374_v55 = vrot.slane %v3413_v44, 7  ;;  %v1377_v18 = vrot.slane %v3397_v41, 1  ;;  %v1378_v62 = vrot.slane %v3413_v44, 1 }
  0xbf   : > { %v1386_v2 = vadd.f32 %v1384_v21, %v1382_v54  ;;  %v1404_v20 = vmul.f32 %v3397_v41, %v4022_v1  ;;  %v1405_v12 = vmul.f32 %v3413_v44, %v4022_v1  ;;  %v3440_v11 = vrot.slane %v3437_v47, 1 }
  0xc0   : > { %v1389_v34 = vadd.f32 %v1387_v63, %v1385_v53  ;;  %v1376_v61 = vsel %vm541_vm0, %v1374_v55, %v1373_v3  ;;  %v1379_v52 = vsel %vm606_vm1, %v1377_v18, %v1378_v62  ;;  %v1375_v39 = vsel %vm541_vm0, %v1373_v3, %v1374_v55 }
  0xc1   : > { %v1390_v1 = vadd.f32 %v1388_v6, %v1386_v2  ;;  %v1400_v33 = vmul.f32 %v1376_v61, %v4019_v25  ;;  %v1408_v26 = vmul.f32 %v1379_v52, %v4062_v22  ;;  %v1380_v31 = vsel %vm606_vm1, %v1378_v62, %v1377_v18 }
  0xc2   : > { %v1393_v36 = vadd.f32 %v1391_v9, %v1389_v34  ;;  %v1401_v48 = vmul.f32 %v1375_v39, %v4019_v25  ;;  %v1409_v28 = vmul.f32 %v1380_v31, %v4062_v22  ;;  %v1417_v5 = vmul.f32 %v3440_v11, %v1356_v40  ;;  %v1591_v31 = vld [vmem:[#allocation2 + $0x20] sm:$0x1] }
  0xc3   : > { %v1394_v0 = vadd.f32 %v1392_v13, %v1390_v1  ;;  %v1402_v63 = vadd.f32 %v1400_v33, %v1398_v56  ;;  %v3461_v37 = vrot.slane %v3458_v51, 1  ;;  %v3469_v25 = vrot.slane %v3466_v10, 1 }
  0xc4   : > { %1395 = vst.msk [vmem:[#allocation2] sm:$0xff] %vm811_vm2, %v1393_v36  ;;  %v1403_v40 = vadd.f32 %v1401_v48, %v1399_v42  ;;  %v1418_v6 = vmul.f32 %v2125_v35, %v3440_v11  ;;  %v1419_v60 = vmul.f32 %v3160_v17, %v3440_v11  ;;  %v1420_v55 = vmul.f32 %v3179_v38, %v3440_v11 }
  0xc5   : > { %1396 = vst.msk [vmem:[#allocation2 + $0x8] sm:$0xff] %vm811_vm2, %v1394_v0  ;;  %v1406_v27 = vadd.f32 %v1404_v20, %v1402_v63  ;;  %v1436_v24 = vmul.f32 %v2125_v35, %v3461_v37  ;;  %v1471_v19 = vmul.f32 %v3160_v17, %v3469_v25  ;;  %v1437_v23 = vmul.f32 %v3160_v17, %v3461_v37 }
  0xc6   : > { %v1407_v54 = vadd.f32 %v1405_v12, %v1403_v40  ;;  %v1472_v8 = vmul.f32 %v3179_v38, %v3469_v25  ;;  %v1438_v9 = vmul.f32 %v3179_v38, %v3461_v37  ;;  %v1473_v21 = vmul.f32 %v3196_v43, %v3469_v25  ;;  %v1590_v38 = vld [vmem:[#allocation2 + $0x10] sm:$0x1] }
  0xc7   : > { %v1410_v13 = vadd.f32 %v1408_v26, %v1406_v27  ;;  %v1452_v3 = vadd.f32 %v1436_v24, %v1417_v5  ;;  %v1453_v53 = vadd.f32 %v1437_v23, %v1418_v6  ;;  %v1439_v17 = vmul.f32 %v3196_v43, %v3461_v37  ;;  %v1592_v40 = vld [vmem:[#allocation2 + $0x30] sm:$0x1]  ;;  %v1593_v27 = vld [vmem:[#allocation2 + $0x40] sm:$0x1] }
  0xc8   : > { %v1411_v18 = vadd.f32 %v1409_v28, %v1407_v54  ;;  %v1454_v62 = vadd.f32 %v1438_v9, %v1419_v60  ;;  %v1474_v2 = vmul.f32 %v3215_v16, %v3469_v25  ;;  %v1421_v34 = vmul.f32 %v3196_v43, %v3440_v11 }
  0xc9   : > { %1412 = vst.msk [vmem:[#allocation2 + $0xf0] sm:$0xff] %vm811_vm2, %v1410_v13  ;;  %v1487_v20 = vadd.f32 %v1471_v19, %v1452_v3  ;;  %v1488_v12 = vadd.f32 %v1472_v8, %v1453_v53  ;;  %v1440_v61 = vmul.f32 %v3215_v16, %v3461_v37  ;;  %v1455_v56 = vadd.f32 %v1439_v17, %v1420_v55 }
  0xca   : > { %1413 = vst.msk [vmem:[#allocation2 + $0xf8] sm:$0xff] %vm811_vm2, %v1411_v18  ;;  %v1489_v52 = vadd.f32 %v1473_v21, %v1454_v62  ;;  %v1475_v39 = vmul.f32 %v3232_v58, %v3469_v25  ;;  %v1422_v1 = vmul.f32 %v3215_v16, %v3440_v11  ;;  %v1441_v43 = vmul.f32 %v3232_v58, %v3461_v37  ;;  %v1594_v21 = vld [vmem:[#allocation2 + $0x50] sm:$0x1] }
  0xcb   : > { %v1589_v33 = vld [vmem:[#allocation2] sm:$0x1]  ;;  %v1621_v22 = vrot.slane %v1487_v20, 7  ;;  %v1622_v26 = vrot.slane %v1488_v12, 7  ;;  %v1456_v42 = vadd.f32 %v1440_v61, %v1421_v34  ;;  %v1490_v48 = vadd.f32 %v1474_v2, %v1455_v56 }
  0xcc   : > { %v1623_v36 = vrot.slane %v1489_v52, 7  ;;  %v1476_v28 = vmul.f32 %v3251_v50, %v3469_v25  ;;  %v1423_v5 = vmul.f32 %v3232_v58, %v3440_v11  ;;  %v1457_v35 = vadd.f32 %v1441_v43, %v1422_v1  ;;  %v1595_v34 = vld [vmem:[#allocation2 + $0x60] sm:$0x1]  ;;  %v2126_v52 = vld [vmem:[%s2227_s29 + $0xa8] sm:$0xff]  ;;  %v1596_v1 = vld [vmem:[#allocation2 + $0x70] sm:$0x1] }
  0xcd   : > { %v1653_v0 = vsub.f32 %v1589_v33, %v1621_v22  ;;  %v1654_v63 = vsub.f32 %v1590_v38, %v1622_v26  ;;  %v1491_v16 = vadd.f32 %v1475_v39, %v1456_v42  ;;  %v1624_v60 = vrot.slane %v1490_v48, 7  ;;  %v2127_v42 = vld [vmem:[%s2227_s29 + $0xb8] sm:$0xff] }
  0xce   : > { %v1655_v6 = vsub.f32 %v1591_v31, %v1623_v36  ;;  %v1442_v24 = vmul.f32 %v3251_v50, %v3461_v37  ;;  %v1477_v19 = vmul.f32 %v3268_v15, %v3469_v25  ;;  %v1492_v58 = vadd.f32 %v1476_v28, %v1457_v35  ;;  %v1597_v28 = vld [vmem:[#allocation2 + $0x80] sm:$0x1]  ;;  %v2128_v35 = vld [vmem:[%s2227_s29 + $0xc8] sm:$0xff] }
  0xcf   : > { %1670 = vst.msk [vmem:[#allocation2] sm:$0x1] %vm1669_vm3, %v1653_v0  ;;  %1671 = vst.msk [vmem:[#allocation2 + $0x10] sm:$0x1] %vm1669_vm3, %v1654_v63  ;;  %v1625_v23 = vrot.slane %v1491_v16, 7  ;;  %v1424_v54 = vmul.f32 %v3251_v50, %v3440_v11  ;;  %v1443_v8 = vmul.f32 %v3268_v15, %v3461_v37  ;;  %v1656_v9 = vsub.f32 %v1592_v40, %v1624_v60 }
  0xd0   : > { %1672 = vst.msk [vmem:[#allocation2 + $0x20] sm:$0x1] %vm1669_vm3, %v1655_v6  ;;  %v1458_v13 = vadd.f32 %v1442_v24, %v1423_v5  ;;  %v1478_v3 = vmul.f32 %v3287_v14, %v3469_v25  ;;  %v1425_v53 = vmul.f32 %v3268_v15, %v3440_v11  ;;  %v1626_v18 = vrot.slane %v1492_v58, 7  ;;  %v1598_v16 = vld [vmem:[#allocation2 + $0x90] sm:$0x1] }
  0xd1   : > { %v1657_v55 = vsub.f32 %v1593_v27, %v1625_v23  ;;  %v1459_v62 = vadd.f32 %v1443_v8, %v1424_v54  ;;  %v1444_v50 = vmul.f32 %v3287_v14, %v3461_v37  ;;  %1673 = vst.msk [vmem:[#allocation2 + $0x30] sm:$0x1] %vm1669_vm3, %v1656_v9  ;;  %v1479_v2 = vmul.f32 %v3304_v49, %v3469_v25  ;;  %v1599_v54 = vld [vmem:[#allocation2 + $0xa0] sm:$0x1]  ;;  %v2129_v8 = vld [vmem:[%s2227_s29 + $0xd8] sm:$0xff] }
  0xd2   : > { %v1493_v17 = vadd.f32 %v1477_v19, %v1458_v13  ;;  %v1426_v20 = vmul.f32 %v3287_v14, %v3440_v11  ;;  %v1445_v12 = vmul.f32 %v3304_v49, %v3461_v37  ;;  %v1658_v15 = vsub.f32 %v1594_v21, %v1626_v18 }
  0xd3   : > { %1674 = vst.msk [vmem:[#allocation2 + $0x40] sm:$0x1] %vm1669_vm3, %v1657_v55  ;;  %v1494_v61 = vadd.f32 %v1478_v3, %v1459_v62  ;;  %v1460_v38 = vadd.f32 %v1444_v50, %v1425_v53  ;;  %v1480_v56 = vmul.f32 %v2126_v52, %v3469_v25  ;;  %v1427_v22 = vmul.f32 %v3304_v49, %v3440_v11  ;;  %v1600_v62 = vld [vmem:[#allocation2 + $0xb0] sm:$0x1] }
  0xd4   : > { %v1627_v39 = vrot.slane %v1493_v17, 7  ;;  %v1461_v33 = vadd.f32 %v1445_v12, %v1426_v20  ;;  %v1446_v14 = vmul.f32 %v2126_v52, %v3461_v37  ;;  %1675 = vst.msk [vmem:[#allocation2 + $0x50] sm:$0x1] %vm1669_vm3, %v1658_v15  ;;  %v1481_v43 = vmul.f32 %v2127_v42, %v3469_v25  ;;  %v2130_v17 = vld [vmem:[%s2227_s29 + $0xe8] sm:$0xff] }
  0xd5   : > { %v1628_v26 = vrot.slane %v1494_v61, 7  ;;  %v1495_v31 = vadd.f32 %v1479_v2, %v1460_v38  ;;  %v1428_v36 = vmul.f32 %v2126_v52, %v3440_v11  ;;  %v1447_v63 = vmul.f32 %v2127_v42, %v3461_v37  ;;  %v2131_v38 = vld [vmem:[%s2227_s29 + $0xf8] sm:$0xff] }
  0xd6   : > { %v1659_v48 = vsub.f32 %v1595_v34, %v1627_v39  ;;  %v1496_v5 = vadd.f32 %v1480_v56, %v1461_v33  ;;  %v1462_v0 = vadd.f32 %v1446_v14, %v1427_v22  ;;  %v1482_v6 = vmul.f32 %v2128_v35, %v3469_v25  ;;  %v1601_v56 = vld [vmem:[#allocation2 + $0xc0] sm:$0x1] }
  0xd7   : > { %v1660_v49 = vsub.f32 %v1596_v1, %v1628_v26  ;;  %v1629_v40 = vrot.slane %v1495_v31, 7  ;;  %v1429_v60 = vmul.f32 %v2127_v42, %v3440_v11  ;;  %v1463_v19 = vadd.f32 %v1447_v63, %v1428_v36  ;;  %v1602_v31 = vld [vmem:[#allocation2 + $0xd0] sm:$0x1] }
  0xd8   : > { %1676 = vst.msk [vmem:[#allocation2 + $0x60] sm:$0x1] %vm1669_vm3, %v1659_v48  ;;  %v1630_v27 = vrot.slane %v1496_v5, 7  ;;  %v1497_v24 = vadd.f32 %v1481_v43, %v1462_v0  ;;  %v1448_v23 = vmul.f32 %v2128_v35, %v3461_v37  ;;  %v1483_v9 = vmul.f32 %v2129_v8, %v3469_v25 }
  0xd9   : > { %1677 = vst.msk [vmem:[#allocation2 + $0x70] sm:$0x1] %vm1669_vm3, %v1660_v49  ;;  %v1661_v58 = vsub.f32 %v1597_v28, %v1629_v40  ;;  %v1430_v21 = vmul.f32 %v2128_v35, %v3440_v11  ;;  %v1449_v13 = vmul.f32 %v2129_v8, %v3461_v37  ;;  %v1498_v55 = vadd.f32 %v1482_v6, %v1463_v19  ;;  %v4063_v35 = vld [vmem:[#allocation15_spill] sm:$0xff] }
  0xda   : > { %v1662_v3 = vsub.f32 %v1598_v16, %v1630_v27  ;;  %v1631_v53 = vrot.slane %v1497_v24, 7  ;;  %v1464_v18 = vadd.f32 %v1448_v23, %v1429_v60  ;;  %v1484_v2 = vmul.f32 %v2130_v17, %v3469_v25 }
  0xdb   : > { %1678 = vst.msk [vmem:[#allocation2 + $0x80] sm:$0x1] %vm1669_vm3, %v1661_v58  ;;  %v1465_v50 = vadd.f32 %v1449_v13, %v1430_v21  ;;  %v1431_v20 = vmul.f32 %v2129_v8, %v3440_v11  ;;  %v1450_v12 = vmul.f32 %v2130_v17, %v3461_v37  ;;  %v1632_v34 = vrot.slane %v1498_v55, 7  ;;  %v1686_v58 = vld [vmem:[#allocation2 + $0xf] sm:$0x1] }
  0xdc   : > { %1679 = vst.msk [vmem:[#allocation2 + $0x90] sm:$0x1] %vm1669_vm3, %v1662_v3  ;;  %v1663_v15 = vsub.f32 %v1599_v54, %v1631_v53  ;;  %v1499_v61 = vadd.f32 %v1483_v9, %v1464_v18  ;;  %v1485_v52 = vmul.f32 %v2131_v38, %v3469_v25  ;;  %v1432_v33 = vmul.f32 %v2130_v17, %v3440_v11  ;;  %v1687_v53 = vld [vmem:[#allocation2 + $0x1f] sm:$0x1] }
  0xdd   : > { %v1500_v39 = vadd.f32 %v1484_v2, %v1465_v50  ;;  %v1466_v1 = vadd.f32 %v1450_v12, %v1431_v20  ;;  %v1451_v22 = vmul.f32 %v2131_v38, %v3461_v37  ;;  %v1664_v14 = vsub.f32 %v1600_v62, %v1632_v34  ;;  %v1603_v37 = vld [vmem:[#allocation2 + $0xe0] sm:$0x1]  ;;  %v1688_v50 = vld [vmem:[#allocation2 + $0x2f] sm:$0x1] }
  0xde   : > { %1680 = vst.msk [vmem:[#allocation2 + $0xa0] sm:$0x1] %vm1669_vm3, %v1663_v15  ;;  %v1633_v26 = vrot.slane %v1499_v61, 7  ;;  %v1486_v42 = vmul.f32 %v3469_v25, %v3413_v44  ;;  %v3569_v43 = vrot.slane %v3437_v47, 2  ;;  %v3572_v5 = vrot.slane %v3458_v51, 2  ;;  %v2132_v44 = vld [vmem:[%s2227_s29] sm:$0xff] }
  0xdf   : > { %v1634_v36 = vrot.slane %v1500_v39, 7  ;;  %v1501_v48 = vadd.f32 %v1485_v52, %v1466_v1  ;;  %v1467_v28 = vadd.f32 %v1451_v22, %v1432_v33  ;;  %1681 = vst.msk [vmem:[#allocation2 + $0xb0] sm:$0x1] %vm1669_vm3, %v1664_v14  ;;  %v3578_v63 = vrot.slane %v3466_v10, 2  ;;  %v1604_v51 = vld [vmem:[#allocation2 + $0xf0] sm:$0x1] }
  0xe0   : > { %v1665_v11 = vsub.f32 %v1601_v56, %v1633_v26  ;;  %v1505_v0 = vmul.f32 %v3569_v43, %v3393_v32  ;;  %v1506_v47 = vmul.f32 %v2132_v44, %v3569_v43  ;;  %v1523_v16 = vmul.f32 %v2132_v44, %v3572_v5  ;;  %v1689_v15 = vld [vmem:[#allocation2 + $0x3f] sm:$0x1]  ;;  %v1690_v1 = vld [vmem:[#allocation2 + $0x4f] sm:$0x1] }
  0xe1   : > { %v1666_v25 = vsub.f32 %v1602_v31, %v1634_v36  ;;  %v1635_v49 = vrot.slane %v1501_v48, 7  ;;  %v1502_v40 = vadd.f32 %v1486_v42, %v1467_v28  ;;  %v1557_v6 = vmul.f32 %v4063_v35, %v3578_v63  ;;  %v1691_v36 = vld [vmem:[#allocation2 + $0x5f] sm:$0x1]  ;;  %v1692_v44 = vld [vmem:[#allocation2 + $0x6f] sm:$0x1] }
  0xe2   : > { %1682 = vst.msk [vmem:[#allocation2 + $0xc0] sm:$0x1] %vm1669_vm3, %v1665_v11  ;;  %v1524_v32 = vmul.f32 %v4063_v35, %v3572_v5  ;;  %v1558_v10 = vmul.f32 %v3169_v4, %v3578_v63  ;;  %v1507_v60 = vmul.f32 %v4063_v35, %v3569_v43  ;;  %v1539_v19 = vadd.f32 %v1523_v16, %v1505_v0  ;;  %v1693_v35 = vld [vmem:[#allocation2 + $0x7f] sm:$0x1] }
  0xe3   : > { %1683 = vst.msk [vmem:[#allocation2 + $0xd0] sm:$0x1] %vm1669_vm3, %v1666_v25  ;;  %v1667_v27 = vsub.f32 %v1603_v37, %v1635_v49  ;;  %v1636_v24 = vrot.slane %v1502_v40, 7  ;;  %v1525_v23 = vmul.f32 %v3169_v4, %v3572_v5  ;;  %v1559_v8 = vmul.f32 %v3188_v45, %v3578_v63 }
  0xe4   : > { %v1540_v54 = vadd.f32 %v1524_v32, %v1506_v47  ;;  %v1508_v9 = vmul.f32 %v3169_v4, %v3569_v43  ;;  %v1526_v21 = vmul.f32 %v3188_v45, %v3572_v5  ;;  %v1573_v3 = vadd.f32 %v1557_v6, %v1539_v19  ;;  %v2133_v32 = vld [vmem:[%s2227_s29 + $0xa0] sm:$0xff] }
  0xe5   : > { %1684 = vst.msk [vmem:[#allocation2 + $0xe0] sm:$0x1] %vm1669_vm3, %v1667_v27  ;;  %v1668_v13 = vsub.f32 %v1604_v51, %v1636_v24  ;;  %v1541_v55 = vadd.f32 %v1525_v23, %v1507_v60  ;;  %v1560_v18 = vmul.f32 %v3205_v46, %v3578_v63  ;;  %v1509_v2 = vmul.f32 %v3188_v45, %v3569_v43  ;;  %v1694_v24 = vld [vmem:[#allocation2 + $0x8f] sm:$0x1] }
  0xe6   : > { %v1574_v62 = vadd.f32 %v1558_v10, %v1540_v54  ;;  %v1542_v17 = vadd.f32 %v1526_v21, %v1508_v9  ;;  %v1527_v4 = vmul.f32 %v3205_v46, %v3572_v5  ;;  %v1702_v20 = vsub.f32 %v1686_v58, %v1573_v3  ;;  %v2134_v54 = vld [vmem:[%s2227_s29 + $0xb0] sm:$0xff] }
  0xe7   : > { %1685 = vst.msk [vmem:[#allocation2 + $0xf0] sm:$0x1] %vm1669_vm3, %v1668_v13  ;;  %v1575_v12 = vadd.f32 %v1559_v8, %v1541_v55  ;;  %v1561_v34 = vmul.f32 %v3224_v57, %v3578_v63  ;;  %v1510_v61 = vmul.f32 %v3205_v46, %v3569_v43  ;;  %v1528_v45 = vmul.f32 %v3224_v57, %v3572_v5  ;;  %v1695_v13 = vld [vmem:[#allocation2 + $0x9f] sm:$0x1] }
  0xe8   : > { %v1703_v38 = vsub.f32 %v1687_v53, %v1574_v62  ;;  %v1576_v52 = vadd.f32 %v1560_v18, %v1542_v17  ;;  %v1543_v56 = vadd.f32 %v1527_v4, %v1509_v2  ;;  %1718 = vst.msk [vmem:[#allocation2 + $0xf] sm:$0x1] %vm1669_vm3, %v1702_v20  ;;  %v1562_v33 = vmul.f32 %v3241_v59, %v3578_v63 }
  0xe9   : > { %v1704_v39 = vsub.f32 %v1688_v50, %v1575_v12  ;;  %v1511_v22 = vmul.f32 %v3224_v57, %v3569_v43  ;;  %v1529_v14 = vmul.f32 %v3241_v59, %v3572_v5  ;;  %v1544_v31 = vadd.f32 %v1528_v45, %v1510_v61  ;;  %v1696_v50 = vld [vmem:[#allocation2 + $0xaf] sm:$0x1]  ;;  %v2136_v12 = vld [vmem:[%s2227_s29 + $0xd0] sm:$0xff]  ;;  %v2137_v45 = vld [vmem:[%s2227_s29 + $0xe0] sm:$0xff] }
  0xea   : > { %1719 = vst.msk [vmem:[#allocation2 + $0x1f] sm:$0x1] %vm1669_vm3, %v1703_v38  ;;  %v1705_v46 = vsub.f32 %v1689_v15, %v1576_v52  ;;  %v1577_v26 = vadd.f32 %v1561_v34, %v1543_v56  ;;  %v1563_v42 = vmul.f32 %v3260_v29, %v3578_v63  ;;  %v1512_v28 = vmul.f32 %v3241_v59, %v3569_v43  ;;  %v1697_v38 = vld [vmem:[#allocation2 + $0xbf] sm:$0x1] }
  0xeb   : > { %1720 = vst.msk [vmem:[#allocation2 + $0x2f] sm:$0x1] %vm1669_vm3, %v1704_v39  ;;  %v1545_v48 = vadd.f32 %v1529_v14, %v1511_v22  ;;  %v1530_v57 = vmul.f32 %v3260_v29, %v3572_v5  ;;  %v1564_v11 = vmul.f32 %v3277_v7, %v3578_v63  ;;  %v1578_v0 = vadd.f32 %v1562_v33, %v1544_v31  ;;  %v1698_v14 = vld [vmem:[#allocation2 + $0xcf] sm:$0x1]  ;;  %v1734_v31 = vld [vmem:[#allocation2] sm:$0xff] }
  0xec   : > { %1721 = vst.msk [vmem:[#allocation2 + $0x3f] sm:$0x1] %vm1669_vm3, %v1705_v46  ;;  %v1706_v37 = vsub.f32 %v1690_v1, %v1577_v26  ;;  %v1513_v47 = vmul.f32 %v3260_v29, %v3569_v43  ;;  %v1531_v25 = vmul.f32 %v3277_v7, %v3572_v5  ;;  %v1565_v40 = vmul.f32 %v3296_v30, %v3578_v63  ;;  %v3670_v1 = vld [vmem:[%s3802_s4] ss:$0 sm:$0xff] }
  0xed   : > { %v1579_v49 = vadd.f32 %v1563_v42, %v1545_v48  ;;  %v1546_v59 = vadd.f32 %v1530_v57, %v1512_v28  ;;  %v1514_v16 = vmul.f32 %v3277_v7, %v3569_v43  ;;  %v1707_v51 = vsub.f32 %v1691_v36, %v1578_v0  ;;  %v2138_v28 = vld [vmem:[%s2227_s29 + $0xf0] sm:$0xff] }
  0xee   : > { %1722 = vst.msk [vmem:[#allocation2 + $0x4f] sm:$0x1] %vm1669_vm3, %v1706_v37  ;;  %v1547_v6 = vadd.f32 %v1531_v25, %v1513_v47  ;;  %v1532_v29 = vmul.f32 %v3296_v30, %v3572_v5  ;;  %v1566_v10 = vmul.f32 %v2133_v32, %v3578_v63  ;;  %v1515_v19 = vmul.f32 %v3296_v30, %v3569_v43  ;;  %v2135_v30 = vld [vmem:[%s2227_s29 + $0xc0] sm:$0xff]  ;;  %v1736_v37 = vld [vmem:[#allocation2 + $0x10] sm:$0xff]  ;;  %v1699_v47 = vld [vmem:[#allocation2 + $0xdf] sm:$0x1] }
  0xef   : > { %v1708_v60 = vsub.f32 %v1692_v44, %v1579_v49  ;;  %v1580_v27 = vadd.f32 %v1564_v11, %v1546_v59  ;;  %v1533_v7 = vmul.f32 %v2133_v32, %v3572_v5  ;;  %1723 = vst.msk [vmem:[#allocation2 + $0x5f] sm:$0x1] %vm1669_vm3, %v1707_v51  ;;  %v1567_v8 = vmul.f32 %v2134_v54, %v3578_v63  ;;  %v1735_v42 = vld [vmem:[#allocation2 + $0x8] sm:$0xff] }
  0xf0   : > { %v1581_v23 = vadd.f32 %v1565_v40, %v1547_v6  ;;  %v1548_v58 = vadd.f32 %v1532_v29, %v1514_v16  ;;  %v1516_v9 = vmul.f32 %v2133_v32, %v3569_v43  ;;  %v1534_v53 = vmul.f32 %v2134_v54, %v3572_v5  ;;  %v1738_v40 = vld [vmem:[#allocation2 + $0x20] sm:$0xff]  ;;  %v1701_v6 = vld [vmem:[#allocation2 + $0xff] sm:$0x1] }
  0xf1   : > { %1724 = vst.msk [vmem:[#allocation2 + $0x6f] sm:$0x1] %vm1669_vm3, %v1708_v60  ;;  %v1709_v21 = vsub.f32 %v1693_v35, %v1580_v27  ;;  %v1549_v3 = vadd.f32 %v1533_v7, %v1515_v19  ;;  %v1568_v55 = vmul.f32 %v2135_v30, %v3578_v63  ;;  %v1517_v17 = vmul.f32 %v2134_v54, %v3569_v43  ;;  %v1737_v0 = vld [vmem:[#allocation2 + $0x18] sm:$0xff]  ;;  %v1700_v35 = vld [vmem:[#allocation2 + $0xef] sm:$0x1]  ;;  %v1740_v60 = vld [vmem:[#allocation2 + $0x30] sm:$0xff] }
  0xf2   : > { %v1710_v18 = vsub.f32 %v1694_v24, %v1581_v23  ;;  %v1582_v62 = vadd.f32 %v1566_v10, %v1548_v58  ;;  %v1535_v2 = vmul.f32 %v2135_v30, %v3572_v5  ;;  %v1550_v20 = vadd.f32 %v1534_v53, %v1516_v9  ;;  %v1742_v58 = vld [vmem:[#allocation2 + $0x40] sm:$0xff] }
  0xf3   : > { %1725 = vst.msk [vmem:[#allocation2 + $0x7f] sm:$0x1] %vm1669_vm3, %v1709_v21  ;;  %v1583_v4 = vadd.f32 %v1567_v8, %v1549_v3  ;;  %v1569_v15 = vmul.f32 %v2136_v12, %v3578_v63  ;;  %v1518_v34 = vmul.f32 %v2135_v30, %v3569_v43  ;;  %v1536_v56 = vmul.f32 %v2136_v12, %v3572_v5  ;;  %v1741_v27 = vld [vmem:[#allocation2 + $0x38] sm:$0xff]  ;;  %v1744_v8 = vld [vmem:[#allocation2 + $0x50] sm:$0xff] }
  0xf4   : > { %1726 = vst.msk [vmem:[#allocation2 + $0x8f] sm:$0x1] %vm1669_vm3, %v1710_v18  ;;  %v1711_v61 = vsub.f32 %v1695_v13, %v1582_v62  ;;  %v1551_v52 = vadd.f32 %v1535_v2, %v1517_v17  ;;  %v1570_v39 = vmul.f32 %v2137_v45, %v3578_v63  ;;  %v1584_v22 = vadd.f32 %v1568_v55, %v1550_v20 }
  0xf5   : > { %v1712_v33 = vsub.f32 %v1696_v50, %v1583_v4  ;;  %v1519_v46 = vmul.f32 %v2136_v12, %v3569_v43  ;;  %v1537_v26 = vmul.f32 %v2137_v45, %v3572_v5  ;;  %v1552_v48 = vadd.f32 %v1536_v56, %v1518_v34  ;;  %v1743_v54 = vld [vmem:[#allocation2 + $0x48] sm:$0xff]  ;;  %v1746_v50 = vld [vmem:[#allocation2 + $0x60] sm:$0xff] }
  0xf6   : > { %1727 = vst.msk [vmem:[#allocation2 + $0x9f] sm:$0x1] %vm1669_vm3, %v1711_v61  ;;  %v1585_v36 = vadd.f32 %v1569_v15, %v1551_v52  ;;  %v1571_v57 = vmul.f32 %v2138_v28, %v3578_v63  ;;  %v1520_v11 = vmul.f32 %v2137_v45, %v3569_v43  ;;  %v1713_v44 = vsub.f32 %v1697_v38, %v1584_v22  ;;  %v1745_v53 = vld [vmem:[#allocation2 + $0x58] sm:$0xff]  ;;  %v1748_v15 = vld [vmem:[#allocation2 + $0x70] sm:$0xff]  ;;  %v1750_v45 = vld [vmem:[#allocation2 + $0x80] sm:$0xff] }
  0xf7   : > { %1728 = vst.msk [vmem:[#allocation2 + $0xaf] sm:$0x1] %vm1669_vm3, %v1712_v33  ;;  %v1553_v25 = vadd.f32 %v1537_v26, %v1519_v46  ;;  %v1538_v49 = vmul.f32 %v2138_v28, %v3572_v5  ;;  %v1572_v59 = vmul.f32 %v3578_v63, %v3397_v41  ;;  %v1586_v51 = vadd.f32 %v1570_v39, %v1552_v48  ;;  %v1739_v63 = vld [vmem:[#allocation2 + $0x28] sm:$0xff]  ;;  %v1752_v33 = vld [vmem:[#allocation2 + $0x90] sm:$0xff] }
  0xf8   : > { %v1714_v16 = vsub.f32 %v1698_v14, %v1585_v36  ;;  %v1773_v43 = vadd.f32 %v3670_v1, %v1734_v31  ;;  %v1774_v29 = vadd.f32 %v3670_v1, %v1735_v42  ;;  %1729 = vst.msk [vmem:[#allocation2 + $0xbf] sm:$0x1] %vm1669_vm3, %v1713_v44  ;;  %v1775_v41 = vadd.f32 %v3670_v1, %v1736_v37  ;;  %v1747_v12 = vld [vmem:[#allocation2 + $0x68] sm:$0xff] }
  0xf9   : > { %v1587_v32 = vadd.f32 %v1571_v57, %v1553_v25  ;;  %v1554_v10 = vadd.f32 %v1538_v49, %v1520_v11  ;;  %v1776_v5 = vadd.f32 %v3670_v1, %v1737_v0  ;;  %v1715_v24 = vsub.f32 %v1699_v47, %v1586_v51  ;;  %v1754_v57 = vld [vmem:[#allocation2 + $0xa0] sm:$0xff]  ;;  %v1756_v25 = vld [vmem:[#allocation2 + $0xb0] sm:$0xff] }
  0xfa   : > { %1730 = vst.msk [vmem:[#allocation2 + $0xcf] sm:$0x1] %vm1669_vm3, %v1714_v16  ;;  %v1805_v19 = vmax.f32 %v1773_v43, 0.0  ;;  %v1806_v7 = vmax.f32 %v1774_v29, 0.0  ;;  %v1777_v23 = vadd.f32 %v3670_v1, %v1738_v40  ;;  %v1807_v13 = vmax.f32 %v1775_v41, 0.0  ;;  %v1749_v34 = vld [vmem:[#allocation2 + $0x78] sm:$0xff] }
  0xfb   : > { %v1716_v9 = vsub.f32 %v1700_v35, %v1587_v32  ;;  %v1588_v21 = vadd.f32 %v1572_v59, %v1554_v10  ;;  %v1808_v3 = vmax.f32 %v1776_v5, 0.0  ;;  %1731 = vst.msk [vmem:[#allocation2 + $0xdf] sm:$0x1] %vm1669_vm3, %v1715_v24  ;;  %v1778_v55 = vadd.f32 %v3670_v1, %v1739_v63  ;;  %v1751_v39 = vld [vmem:[#allocation2 + $0x88] sm:$0xff]  ;;  %v1758_v35 = vld [vmem:[#allocation2 + $0xc0] sm:$0xff]  ;;  %v1760_v43 = vld [vmem:[#allocation2 + $0xd0] sm:$0xff] }
  0xfc   : > { %1837 = vst.msk [vmem:[%s3689_s28] sm:$0xff] %vm811_vm2, %v1805_v19  ;;  %1838 = vst.msk [vmem:[%s3689_s28 + $0x8] sm:$0xff] %vm811_vm2, %v1806_v7  ;;  %v1809_v30 = vmax.f32 %v1777_v23, 0.0  ;;  %v1779_v18 = vadd.f32 %v3670_v1, %v1740_v60  ;;  %v1780_v62 = vadd.f32 %v3670_v1, %v1741_v27  ;;  %v1781_v2 = vadd.f32 %v3670_v1, %v1742_v58  ;;  %v1762_v19 = vld [vmem:[#allocation2 + $0xe0] sm:$0xff] }
  0xfd   : > { %1732 = vst.msk [vmem:[#allocation2 + $0xef] sm:$0x1] %vm1669_vm3, %v1716_v9  ;;  %v1717_v17 = vsub.f32 %v1701_v6, %v1588_v21  ;;  %v1782_v4 = vadd.f32 %v3670_v1, %v1743_v54  ;;  %v1783_v20 = vadd.f32 %v3670_v1, %v1744_v8  ;;  %v1810_v61 = vmax.f32 %v1778_v55, 0.0  ;;  %v1753_v31 = vld [vmem:[#allocation2 + $0x98] sm:$0xff]  ;;  %v1764_v9 = vld [vmem:[#allocation2 + $0xf0] sm:$0xff] }
  0xfe   : > { %1839 = vst.msk [vmem:[%s3689_s28 + $0x10] sm:$0xff] %vm811_vm2, %v1807_v13  ;;  %1840 = vst.msk [vmem:[%s3689_s28 + $0x18] sm:$0xff] %vm811_vm2, %v1808_v3  ;;  %v1811_v38 = vmax.f32 %v1779_v18, 0.0  ;;  %v1812_v52 = vmax.f32 %v1780_v62, 0.0  ;;  %v1784_v56 = vadd.f32 %v3670_v1, %v1745_v53  ;;  %v1813_v22 = vmax.f32 %v1781_v2, 0.0  ;;  %v1755_v47 = vld [vmem:[#allocation2 + $0xa8] sm:$0xff] }
  0xff   : > { %1841 = vst.msk [vmem:[%s3689_s28 + $0x20] sm:$0xff] %vm811_vm2, %v1809_v30  ;;  %v1814_v14 = vmax.f32 %v1782_v4, 0.0  ;;  %v1815_v46 = vmax.f32 %v1783_v20, 0.0  ;;  %v1785_v26 = vadd.f32 %v3670_v1, %v1746_v50  ;;  %1842 = vst.msk [vmem:[%s3689_s28 + $0x28] sm:$0xff] %vm811_vm2, %v1810_v61  ;;  %v1786_v36 = vadd.f32 %v3670_v1, %v1747_v12  ;;  %v1757_v49 = vld [vmem:[#allocation2 + $0xb8] sm:$0xff] }
 0x100   : > { %1733 = vst.msk [vmem:[#allocation2 + $0xff] sm:$0x1] %vm1669_vm3, %v1717_v17  ;;  %v1816_v42 = vmax.f32 %v1784_v56, 0.0  ;;  %v1787_v48 = vadd.f32 %v3670_v1, %v1748_v15  ;;  %v1788_v28 = vadd.f32 %v3670_v1, %v1749_v34  ;;  %v1789_v37 = vadd.f32 %v3670_v1, %v1750_v45 }
 0x101   : > { %1843 = vst.msk [vmem:[%s3689_s28 + $0x30] sm:$0xff] %vm811_vm2, %v1811_v38  ;;  %1844 = vst.msk [vmem:[%s3689_s28 + $0x38] sm:$0xff] %vm811_vm2, %v1812_v52  ;;  %v1817_v11 = vmax.f32 %v1785_v26, 0.0  ;;  %v1790_v0 = vadd.f32 %v3670_v1, %v1751_v39  ;;  %v1791_v44 = vadd.f32 %v3670_v1, %v1752_v33  ;;  %v1818_v59 = vmax.f32 %v1786_v36, 0.0  ;;  %v1759_v6 = vld [vmem:[#allocation2 + $0xc8] sm:$0xff] }
 0x102   : > { %1845 = vst.msk [vmem:[%s3689_s28 + $0x40] sm:$0xff] %vm811_vm2, %v1813_v22  ;;  %1846 = vst.msk [vmem:[%s3689_s28 + $0x48] sm:$0xff] %vm811_vm2, %v1814_v14  ;;  %v1819_v40 = vmax.f32 %v1787_v48, 0.0  ;;  %v1820_v16 = vmax.f32 %v1788_v28, 0.0  ;;  %v1792_v51 = vadd.f32 %v3670_v1, %v1753_v31  ;;  %v1821_v29 = vmax.f32 %v1789_v37, 0.0  ;;  %v1761_v5 = vld [vmem:[#allocation2 + $0xd8] sm:$0xff] }
 0x103   : > { %1847 = vst.msk [vmem:[%s3689_s28 + $0x50] sm:$0xff] %vm811_vm2, %v1815_v46  ;;  %1848 = vst.msk [vmem:[%s3689_s28 + $0x58] sm:$0xff] %vm811_vm2, %v1816_v42  ;;  %v1822_v32 = vmax.f32 %v1790_v0, 0.0  ;;  %v1823_v10 = vmax.f32 %v1791_v44, 0.0  ;;  %v1793_v41 = vadd.f32 %v3670_v1, %v1754_v57  ;;  %v1794_v60 = vadd.f32 %v3670_v1, %v1755_v47 }
 0x104   : > { %1849 = vst.msk [vmem:[%s3689_s28 + $0x60] sm:$0xff] %vm811_vm2, %v1817_v11  ;;  %1850 = vst.msk [vmem:[%s3689_s28 + $0x68] sm:$0xff] %vm811_vm2, %v1818_v59  ;;  %v1824_v63 = vmax.f32 %v1792_v51, 0.0  ;;  %v1795_v27 = vadd.f32 %v3670_v1, %v1756_v25  ;;  %v1796_v24 = vadd.f32 %v3670_v1, %v1757_v49  ;;  %v1797_v23 = vadd.f32 %v3670_v1, %v1758_v35  ;;  %v1763_v8 = vld [vmem:[#allocation2 + $0xe8] sm:$0xff] }
 0x105   : > { %1851 = vst.msk [vmem:[%s3689_s28 + $0x70] sm:$0xff] %vm811_vm2, %v1819_v40  ;;  %1852 = vst.msk [vmem:[%s3689_s28 + $0x78] sm:$0xff] %vm811_vm2, %v1820_v16  ;;  %v1825_v7 = vmax.f32 %v1793_v41, 0.0  ;;  %v1798_v58 = vadd.f32 %v3670_v1, %v1759_v6  ;;  %v1799_v54 = vadd.f32 %v3670_v1, %v1760_v43  ;;  %v1826_v21 = vmax.f32 %v1794_v60, 0.0 }
 0x106   : > { %1853 = vst.msk [vmem:[%s3689_s28 + $0x80] sm:$0xff] %vm811_vm2, %v1821_v29  ;;  %1854 = vst.msk [vmem:[%s3689_s28 + $0x88] sm:$0xff] %vm811_vm2, %v1822_v32  ;;  %v1827_v13 = vmax.f32 %v1795_v27, 0.0  ;;  %v1828_v3 = vmax.f32 %v1796_v24, 0.0  ;;  %v1800_v53 = vadd.f32 %v3670_v1, %v1761_v5  ;;  %v1829_v55 = vmax.f32 %v1797_v23, 0.0 }
 0x107   : > { %1855 = vst.msk [vmem:[%s3689_s28 + $0x90] sm:$0xff] %vm811_vm2, %v1823_v10  ;;  %1856 = vst.msk [vmem:[%s3689_s28 + $0x98] sm:$0xff] %vm811_vm2, %v1824_v63  ;;  %v1765_v30 = vld [vmem:[#allocation2 + $0xf8] sm:$0xff]  ;;  %v1830_v18 = vmax.f32 %v1798_v58, 0.0  ;;  %v1831_v62 = vmax.f32 %v1799_v54, 0.0  ;;  %v1801_v50 = vadd.f32 %v3670_v1, %v1762_v19  ;;  %v1802_v2 = vadd.f32 %v3670_v1, %v1763_v8 }
 0x108   : > { %1857 = vst.msk [vmem:[%s3689_s28 + $0xa0] sm:$0xff] %vm811_vm2, %v1825_v7  ;;  %1858 = vst.msk [vmem:[%s3689_s28 + $0xa8] sm:$0xff] %vm811_vm2, %v1826_v21  ;;  %v1832_v17 = vmax.f32 %v1800_v53, 0.0  ;;  %v1803_v4 = vadd.f32 %v3670_v1, %v1764_v9  ;;  %v1804_v20 = vadd.f32 %v3670_v1, %v1765_v30 }
 0x109   : > { %1859 = vst.msk [vmem:[%s3689_s28 + $0xb0] sm:$0xff] %vm811_vm2, %v1827_v13  ;;  %1860 = vst.msk [vmem:[%s3689_s28 + $0xb8] sm:$0xff] %vm811_vm2, %v1828_v3  ;;  %v1833_v12 = vmax.f32 %v1801_v50, 0.0  ;;  %v1834_v15 = vmax.f32 %v1802_v2, 0.0 }
 0x10a   : > { %1861 = vst.msk [vmem:[%s3689_s28 + $0xc0] sm:$0xff] %vm811_vm2, %v1829_v55  ;;  %1862 = vst.msk [vmem:[%s3689_s28 + $0xc8] sm:$0xff] %vm811_vm2, %v1830_v18  ;;  %v1835_v34 = vmax.f32 %v1803_v4, 0.0  ;;  %v1836_v61 = vmax.f32 %v1804_v20, 0.0 }
 0x10b   : > { %1863 = vst.msk [vmem:[%s3689_s28 + $0xd0] sm:$0xff] %vm811_vm2, %v1831_v62  ;;  %1864 = vst.msk [vmem:[%s3689_s28 + $0xd8] sm:$0xff] %vm811_vm2, %v1832_v17 }
 0x10c   : > { %1865 = vst.msk [vmem:[%s3689_s28 + $0xe0] sm:$0xff] %vm811_vm2, %v1833_v12  ;;  %1866 = vst.msk [vmem:[%s3689_s28 + $0xe8] sm:$0xff] %vm811_vm2, %v1834_v15 }
 0x10d   : > { %1867 = vst.msk [vmem:[%s3689_s28 + $0xf0] sm:$0xff] %vm811_vm2, %v1835_v34  ;;  %1868 = vst.msk [vmem:[%s3689_s28 + $0xf8] sm:$0xff] %vm811_vm2, %v1836_v61 }
 0x10e PF: > { %s15_s20 = sadd.s32 1, %s2161_s20   ;;  %s4064_s18 = smov %s2157_s19 }
 0x10f   : > { %p12_p5 = scmp.ge.s32.totalorder %s15_s20, 4   ;;  %s4065_s19 = smov %s4067_s21 }
 0x111   :  { %14 = sbr.rel (!%p12_p5) target bundleno = 2 (0x2), region = 84 }

</bundles_post_ra>
